<compile_context>
chip_gen: v7x
topology: tpu7x:2x2x1
jax: 0.10.0
libtpu: 0.0.40
codegen_flags: <defaults>
</compile_context>

<pallas_src>
import functools

import jax
import jax.numpy as jnp
from jax.experimental import pallas as pl
from jax.experimental.pallas import tpu as pltpu


def _round_up(v, m):
    return ((v + m - 1) // m) * m


def _resblock_kernel(x_ref, w1_ref, b1_ref, w2_ref, b2_ref,
                     fc1w_ref, fc1b_ref, fc2wt_ref, fc2b_ref,
                     out_ref, pad_ref, *, res_scale, ksize, width):
    # x_ref / out_ref blocks: (1, C, M) — one image per grid step, M = H*W on lanes.
    _, C, M = x_ref.shape
    K = ksize
    P = K // 2
    W = width
    L = pad_ref.shape[1]
    base = _round_up(P * (W + 1), 128)         # lane-aligned start of the interior

    # Zero the lane-aligned halo regions of the bf16 staging buffer.  The interior
    # [base, base+M) is fully overwritten before each conv.  Re-done every grid step so it
    # is correct regardless of how the "parallel" batch axis is sharded across TensorCores
    # (it is only two aligned stores now, so the cost is negligible).
    pad_ref[:, 0:base] = jnp.zeros((C, base), jnp.bfloat16)
    pad_ref[:, base + M:L] = jnp.zeros((C, L - base - M), jnp.bfloat16)

    # Column-wrap masks: the flattened row-padded layout wraps j-1 / j+1 reads across row
    # boundaries, so left/right taps mask those output lanes.  Row-out-of-range reads land
    # in the zeroed halo and need no mask.  Built once, reused by both convs.
    col = jax.lax.broadcasted_iota(jnp.int32, (C, M), 1) % W
    col_valid = {}
    for d in range(-P, P + 1):
        if d < 0:
            col_valid[d] = col >= -d
        elif d > 0:
            col_valid[d] = col < (W - d)

    def conv_same(w_ref, b_ref, interior_cm_f32):
        # Stage the interior in bf16 (one cast); accumulate 9 shallow MXU matmuls in f32.
        pad_ref[:, base:base + M] = interior_cm_f32.astype(jnp.bfloat16)
        acc = jnp.zeros((C, M), jnp.float32)
        for di in range(K):
            for dj in range(K):
                s = base + (di - P) * W + (dj - P)
                patch = pad_ref[:, s:s + M]                         # (C_in, M) bf16
                w_tap = w_ref[di * K + dj]                          # (C_out, C_in) bf16
                contrib = jnp.dot(w_tap, patch,
                                  preferred_element_type=jnp.float32)   # (C_out, M) f32
                d = dj - P
                if d != 0:
                    contrib = jnp.where(col_valid[d], contrib, 0.0)
                acc = acc + contrib
        return acc + b_ref[...]                                     # bias (C,1) bcast over M

    x = x_ref[0].astype(jnp.float32)                                # (C, M) f32

    # Conv -> ReLU -> Conv (all elementwise math stays f32).
    h1 = jnp.maximum(conv_same(w1_ref, b1_ref, x), 0.0)
    h2 = conv_same(w2_ref, b2_ref, h1)

    # Channel attention, kept OFF the MXU (GAP on XLU, tiny FCs as broadcast-mul + reduce
    # on VPU/XLU, sigmoid on EUP): removes two MXU push/drain latencies per image.
    gap = jnp.mean(h2, axis=1, keepdims=True)                                    # (C, 1)
    f1 = jnp.sum(gap * fc1w_ref[...], axis=0, keepdims=True) + fc1b_ref[...]     # (1, hid)
    f1 = jnp.maximum(f1, 0.0)
    logit = jnp.sum(f1 * fc2wt_ref[...], axis=1, keepdims=True) + fc2b_ref[...]  # (C, 1)
    att = jax.nn.sigmoid(logit)                                                  # (C, 1)

    out = x + res_scale * (h2 * att)
    out_ref[0] = out.astype(out_ref.dtype)                          # lane-dense (M=256) store


def _const_spec(shape):
    """BlockSpec covering a whole (small) array, constant across the grid."""
    nd = len(shape)
    return pl.BlockSpec(shape, lambda n, _nd=nd: (0,) * _nd)


def resblock_forward(x_nchw, params, *, res_scale=1.0):
    """x_nchw: (N, C, H, W).  params: (w1, b1, w2, b2, fc1w, fc1b, fc2w, fc2b)."""
    w1, b1, w2, b2, fc1w, fc1b, fc2w, fc2b = params
    N, C, H, W = x_nchw.shape
    K = w1.shape[0]
    P = K // 2
    hidden = fc1w.shape[1]
    M = H * W

    # Lane-dense I/O: (N,C,H,W) -> (N,C,H*W) is a free trailing-dim reshape; no transposes.
    x_flat = x_nchw.reshape(N, C, M)

    # Per-tap transposed conv weights for the (C, M)-oriented matmul; bf16 MXU operands
    # (f32 accumulation stays inside the kernel).
    w1t = jnp.transpose(w1, (0, 1, 3, 2)).reshape(K * K, C, C).astype(jnp.bfloat16)
    w2t = jnp.transpose(w2, (0, 1, 3, 2)).reshape(K * K, C, C).astype(jnp.bfloat16)
    b1c = b1.reshape(C, 1)
    b2c = b2.reshape(C, 1)
    fc2wt = jnp.transpose(fc2w, (1, 0))          # (C, hidden)
    fc2bc = fc2b.reshape(C, 1)

    base = _round_up(P * (W + 1), 128)
    L = base + _round_up(M + P * (W + 1), 128)   # flattened row-padded staging length

    kernel = functools.partial(_resblock_kernel, res_scale=res_scale, ksize=K, width=W)

    # VMEM budget derived from actual need (double-buffered I/O blocks + weights + bf16
    # staging) with generous headroom, kept well below v7x's 64 MiB physical VMEM.
    itemsize = x_nchw.dtype.itemsize
    need = (4 * C * M * itemsize                 # in + out blocks, double-buffered
            + 2 * 2 * K * K * C * C * 2          # two bf16 conv-weight tensors, x2 buffers
            + C * L * 2                          # bf16 staging scratch
            + 64 * 1024)                         # biases + CA params + slack
    vmem_limit = int(min(48 * 2**20, max(8 * 2**20, 8 * need)))

    flops = N * 2 * (2 * M * K * K * C * C)      # the two convs dominate
    bytes_accessed = (2 * N * C * M * itemsize + 2 * K * K * C * C * 2
                      + 4 * C * hidden * 4)
    cost = pl.CostEstimate(flops=flops, transcendentals=N * C,
                           bytes_accessed=bytes_accessed)

    out_flat = pl.pallas_call(
        kernel,
        out_shape=jax.ShapeDtypeStruct((N, C, M), x_nchw.dtype),
        grid=(N,),
        in_specs=[
            pl.BlockSpec((1, C, M), lambda n: (n, 0, 0)),          # x: one image per step
            _const_spec((K * K, C, C)), _const_spec((C, 1)),       # conv1 W^T taps / bias
            _const_spec((K * K, C, C)), _const_spec((C, 1)),       # conv2 W^T taps / bias
            _const_spec((C, hidden)), _const_spec((1, hidden)),    # CA fc1
            _const_spec((C, hidden)), _const_spec((C, 1)),         # CA fc2 (transposed)
        ],
        out_specs=pl.BlockSpec((1, C, M), lambda n: (n, 0, 0)),
        scratch_shapes=[pltpu.VMEM((C, L), jnp.bfloat16)],
        compiler_params=pltpu.CompilerParams(
            dimension_semantics=("parallel",),
            vmem_limit_bytes=vmem_limit),
        cost_estimate=cost,
    )(x_flat, w1t, b1c, w2t, b2c, fc1w, fc1b, fc2wt, fc2bc)

    return out_flat.reshape(N, C, H, W)


def _reference_forward(x_nchw, params, *, res_scale=1.0):
    # Pure-JAX f32 reference (NHWC) for a correctness sanity check.
    w1, b1, w2, b2, fc1w, fc1b, fc2w, fc2b = params
    x = jnp.transpose(x_nchw, (0, 2, 3, 1)).astype(jnp.float32)
    dn = ('NHWC', 'HWIO', 'NHWC')
    h1 = jax.lax.conv_general_dilated(x, w1, (1, 1), 'SAME', dimension_numbers=dn) + b1
    h1 = jnp.maximum(h1, 0.0)
    h2 = jax.lax.conv_general_dilated(h1, w2, (1, 1), 'SAME', dimension_numbers=dn) + b2
    gap = h2.mean(axis=(1, 2))
    f1 = jnp.maximum(gap @ fc1w + fc1b, 0.0)
    att = jax.nn.sigmoid(f1 @ fc2w + fc2b)
    out = x + res_scale * (h2 * att[:, None, None, :])
    return jnp.transpose(out, (0, 3, 1, 2)).astype(x_nchw.dtype)


def make_params(key, num_chans, kernel_size=3, reduction=16):
    hidden = num_chans // reduction
    ks = jax.random.split(key, 8)
    s = 0.1
    w1 = s * jax.random.normal(ks[0], (kernel_size, kernel_size, num_chans, num_chans), jnp.float32)
    b1 = s * jax.random.normal(ks[1], (1, num_chans), jnp.float32)
    w2 = s * jax.random.normal(ks[2], (kernel_size, kernel_size, num_chans, num_chans), jnp.float32)
    b2 = s * jax.random.normal(ks[3], (1, num_chans), jnp.float32)
    fc1w = s * jax.random.normal(ks[4], (num_chans, hidden), jnp.float32)
    fc1b = s * jax.random.normal(ks[5], (1, hidden), jnp.float32)
    fc2w = s * jax.random.normal(ks[6], (hidden, num_chans), jnp.float32)
    fc2b = s * jax.random.normal(ks[7], (1, num_chans), jnp.float32)
    return (w1, b1, w2, b2, fc1w, fc1b, fc2w, fc2b)


if __name__ == "__main__":
    key = jax.random.PRNGKey(0)
    k_x, k_p = jax.random.split(key)

    # num_chans=32 with reduction=16 -> hidden=2 (channels must be >= reduction).
    N, C, H, W = 2, 32, 16, 16
    res_scale = 1.0

    x = jax.random.normal(k_x, (N, C, H, W), jnp.float32)
    params = make_params(k_p, num_chans=C, kernel_size=3, reduction=16)

    out = resblock_forward(x, params, res_scale=res_scale)
    out = jax.block_until_ready(out)

    ref = jax.block_until_ready(_reference_forward(x, params, res_scale=res_scale))
    assert out.shape == (N, C, H, W)
    # bf16 conv operands (activations + weights) with f32 accumulation vs a pure-f32
    # reference -> loose tolerance (acceptable for super-resolution workloads).
    max_err = jnp.max(jnp.abs(out - ref))
    mean_err = jnp.mean(jnp.abs(out - ref))
    assert max_err < 2e-1, f"Pallas kernel mismatch vs JAX reference (max {max_err})"
    assert mean_err < 2e-2, f"Pallas kernel mismatch vs JAX reference (mean {mean_err})"

    print("KERNEL_OK")
</pallas_src>

<mosaic_0001>
module attributes {stable_mosaic.version = 11 : i64} {
  func.func @_resblock_kernel(%arg0: i32, %arg1: memref<1x32x256xf32, #tpu.memory_space<vmem>>, %arg2: memref<9x32x32xbf16, #tpu.memory_space<vmem>>, %arg3: memref<32x1xf32, #tpu.memory_space<vmem>>, %arg4: memref<9x32x32xbf16, #tpu.memory_space<vmem>>, %arg5: memref<32x1xf32, #tpu.memory_space<vmem>>, %arg6: memref<32x2xf32, #tpu.memory_space<vmem>>, %arg7: memref<1x2xf32, #tpu.memory_space<vmem>>, %arg8: memref<32x2xf32, #tpu.memory_space<vmem>>, %arg9: memref<32x1xf32, #tpu.memory_space<vmem>>, %arg10: memref<1x32x256xf32, #tpu.memory_space<vmem>>, %arg11: memref<32x512xbf16, #tpu.memory_space<vmem>>) attributes {dimension_semantics = [#tpu.dimension_semantics<parallel>], iteration_bounds = array<i64: 2>, scalar_prefetch = 0 : i64, scratch_operands = 1 : i64, tpu.core_type = #tpu.core_type<tc>, window_params = [{transform_indices = @transform_0, window_bounds = array<i64: 1, 32, 256>}, {pipeline_mode = #tpu.pipeline_mode<synchronous>, transform_indices = @transform_1, window_bounds = array<i64: 9, 32, 32>}, {pipeline_mode = #tpu.pipeline_mode<synchronous>, transform_indices = @transform_2, window_bounds = array<i64: 32, 1>}, {pipeline_mode = #tpu.pipeline_mode<synchronous>, transform_indices = @transform_3, window_bounds = array<i64: 9, 32, 32>}, {pipeline_mode = #tpu.pipeline_mode<synchronous>, transform_indices = @transform_4, window_bounds = array<i64: 32, 1>}, {pipeline_mode = #tpu.pipeline_mode<synchronous>, transform_indices = @transform_5, window_bounds = array<i64: 32, 2>}, {pipeline_mode = #tpu.pipeline_mode<synchronous>, transform_indices = @transform_6, window_bounds = array<i64: 1, 2>}, {pipeline_mode = #tpu.pipeline_mode<synchronous>, transform_indices = @transform_7, window_bounds = array<i64: 32, 2>}, {pipeline_mode = #tpu.pipeline_mode<synchronous>, transform_indices = @transform_8, window_bounds = array<i64: 32, 1>}, {transform_indices = @transform_9, window_bounds = array<i64: 1, 32, 256>}]} {
    %cst = arith.constant 0.000000e+00 : bf16
    %0 = vector.broadcast %cst : bf16 to vector<32x128xbf16>
    %c0 = arith.constant 0 : index
    %c0_0 = arith.constant 0 : index
    %1 = vector.load %arg11[%c0, %c0_0] : memref<32x512xbf16, #tpu.memory_space<vmem>>, vector<32x128xbf16>
    tpu.vector_store %arg11[%c0, %c0_0], %0 {strides = array<i32>} : memref<32x512xbf16, #tpu.memory_space<vmem>>, vector<32x128xbf16>,
    %cst_1 = arith.constant 0.000000e+00 : bf16
    %2 = vector.broadcast %cst_1 : bf16 to vector<32x128xbf16>
    %c0_2 = arith.constant 0 : index
    %c384 = arith.constant 384 : index
    %3 = vector.load %arg11[%c0_2, %c384] : memref<32x512xbf16, #tpu.memory_space<vmem>>, vector<32x128xbf16>
    tpu.vector_store %arg11[%c0_2, %c384], %2 {strides = array<i32>} : memref<32x512xbf16, #tpu.memory_space<vmem>>, vector<32x128xbf16>,
    %4 = tpu.iota {dimensions = array<i32: 1>} : vector<32x256xi32>
    %c16_i32 = arith.constant 16 : i32
    %c0_i32 = arith.constant 0 : i32
    %5 = arith.cmpi eq, %c16_i32, %c0_i32 : i32
    %c1_i32 = arith.constant 1 : i32
    %6 = arith.select %5, %c1_i32, %c16_i32 : i32
    %7 = vector.broadcast %6 : i32 to vector<32x256xi32>
    %8 = arith.remsi %4, %7 : vector<32x256xi32>
    %c0_i32_3 = arith.constant 0 : i32
    %9 = vector.broadcast %c0_i32_3 : i32 to vector<32x256xi32>
    %10 = arith.cmpi ne, %8, %9 : vector<32x256xi32>
    %c0_i32_4 = arith.constant 0 : i32
    %11 = vector.broadcast %c0_i32_4 : i32 to vector<32x256xi32>
    %12 = arith.cmpi slt, %8, %11 : vector<32x256xi32>
    %c0_i32_5 = arith.constant 0 : i32
    %13 = arith.cmpi slt, %6, %c0_i32_5 : i32
    %14 = vector.broadcast %13 : i1 to vector<32x256xi1>
    %15 = vector.broadcast %14 : vector<32x256xi1> to vector<32x256xi1>
    %16 = arith.xori %12, %15 : vector<32x256xi1>
    %17 = arith.andi %16, %10 : vector<32x256xi1>
    %18 = vector.broadcast %6 : i32 to vector<32x256xi32>
    %19 = arith.addi %8, %18 : vector<32x256xi32>
    %20 = arith.select %17, %19, %8 : vector<32x256xi1>, vector<32x256xi32>
    %c1_i32_6 = arith.constant 1 : i32
    %21 = vector.broadcast %c1_i32_6 : i32 to vector<32x256xi32>
    %22 = arith.cmpi sge, %20, %21 : vector<32x256xi32>
    %c15_i32 = arith.constant 15 : i32
    %23 = vector.broadcast %c15_i32 : i32 to vector<32x256xi32>
    %24 = arith.cmpi slt, %20, %23 : vector<32x256xi32>
    %c0_7 = arith.constant 0 : index
    %c0_8 = arith.constant 0 : index
    %c0_9 = arith.constant 0 : index
    %25 = vector.load %arg1[%c0_7, %c0_8, %c0_9] : memref<1x32x256xf32, #tpu.memory_space<vmem>>, vector<1x32x256xf32>
    %26 = vector.shape_cast %25 : vector<1x32x256xf32> to vector<32x256xf32>
    %27 = arith.truncf %26 : vector<32x256xf32> to vector<32x256xbf16>
    %c0_10 = arith.constant 0 : index
    %c128 = arith.constant 128 : index
    %28 = vector.load %arg11[%c0_10, %c128] : memref<32x512xbf16, #tpu.memory_space<vmem>>, vector<32x256xbf16>
    tpu.vector_store %arg11[%c0_10, %c128], %27 {strides = array<i32>} : memref<32x512xbf16, #tpu.memory_space<vmem>>, vector<32x256xbf16>,
    %cst_11 = arith.constant 0.000000e+00 : f32
    %29 = vector.broadcast %cst_11 : f32 to vector<32x256xf32>
    %c0_12 = arith.constant 0 : index
    %c111 = arith.constant 111 : index
    %30 = vector.load %arg11[%c0_12, %c111] : memref<32x512xbf16, #tpu.memory_space<vmem>>, vector<32x256xbf16>
    %c0_13 = arith.constant 0 : index
    %c0_14 = arith.constant 0 : index
    %c0_15 = arith.constant 0 : index
    %31 = vector.load %arg2[%c0_13, %c0_14, %c0_15] : memref<9x32x32xbf16, #tpu.memory_space<vmem>>, vector<1x32x32xbf16>
    %32 = vector.shape_cast %31 : vector<1x32x32xbf16> to vector<32x32xbf16>
    %cst_16 = arith.constant dense<0.000000e+00> : vector<32x256xf32>
    %33 = tpu.matmul %32, %30, %cst_16 {dimension_numbers = #tpu.dot_dimension_numbers<[1], [0], [0], [1], [0, 0, 1, 1], [], []>} : vector<32x32xbf16>, vector<32x256xbf16>, vector<32x256xf32> -> vector<32x256xf32>
    %cst_17 = arith.constant 0.000000e+00 : f32
    %34 = vector.broadcast %cst_17 : f32 to vector<32x256xf32>
    %35 = arith.select %22, %33, %34 : vector<32x256xi1>, vector<32x256xf32>
    %36 = arith.addf %29, %35 : vector<32x256xf32>
    %c0_18 = arith.constant 0 : index
    %c112 = arith.constant 112 : index
    %37 = vector.load %arg11[%c0_18, %c112] : memref<32x512xbf16, #tpu.memory_space<vmem>>, vector<32x256xbf16>
    %c1 = arith.constant 1 : index
    %c0_19 = arith.constant 0 : index
    %c0_20 = arith.constant 0 : index
    %38 = vector.load %arg2[%c1, %c0_19, %c0_20] : memref<9x32x32xbf16, #tpu.memory_space<vmem>>, vector<1x32x32xbf16>
    %39 = vector.shape_cast %38 : vector<1x32x32xbf16> to vector<32x32xbf16>
    %cst_21 = arith.constant dense<0.000000e+00> : vector<32x256xf32>
    %40 = tpu.matmul %39, %37, %cst_21 {dimension_numbers = #tpu.dot_dimension_numbers<[1], [0], [0], [1], [0, 0, 1, 1], [], []>} : vector<32x32xbf16>, vector<32x256xbf16>, vector<32x256xf32> -> vector<32x256xf32>
    %41 = arith.addf %36, %40 : vector<32x256xf32>
    %c0_22 = arith.constant 0 : index
    %c113 = arith.constant 113 : index
    %42 = vector.load %arg11[%c0_22, %c113] : memref<32x512xbf16, #tpu.memory_space<vmem>>, vector<32x256xbf16>
    %c2 = arith.constant 2 : index
    %c0_23 = arith.constant 0 : index
    %c0_24 = arith.constant 0 : index
    %43 = vector.load %arg2[%c2, %c0_23, %c0_24] : memref<9x32x32xbf16, #tpu.memory_space<vmem>>, vector<1x32x32xbf16>
    %44 = vector.shape_cast %43 : vector<1x32x32xbf16> to vector<32x32xbf16>
    %cst_25 = arith.constant dense<0.000000e+00> : vector<32x256xf32>
    %45 = tpu.matmul %44, %42, %cst_25 {dimension_numbers = #tpu.dot_dimension_numbers<[1], [0], [0], [1], [0, 0, 1, 1], [], []>} : vector<32x32xbf16>, vector<32x256xbf16>, vector<32x256xf32> -> vector<32x256xf32>
    %cst_26 = arith.constant 0.000000e+00 : f32
    %46 = vector.broadcast %cst_26 : f32 to vector<32x256xf32>
    %47 = arith.select %24, %45, %46 : vector<32x256xi1>, vector<32x256xf32>
    %48 = arith.addf %41, %47 : vector<32x256xf32>
    %c0_27 = arith.constant 0 : index
    %c127 = arith.constant 127 : index
    %49 = vector.load %arg11[%c0_27, %c127] : memref<32x512xbf16, #tpu.memory_space<vmem>>, vector<32x256xbf16>
    %c3 = arith.constant 3 : index
    %c0_28 = arith.constant 0 : index
    %c0_29 = arith.constant 0 : index
    %50 = vector.load %arg2[%c3, %c0_28, %c0_29] : memref<9x32x32xbf16, #tpu.memory_space<vmem>>, vector<1x32x32xbf16>
    %51 = vector.shape_cast %50 : vector<1x32x32xbf16> to vector<32x32xbf16>
    %cst_30 = arith.constant dense<0.000000e+00> : vector<32x256xf32>
    %52 = tpu.matmul %51, %49, %cst_30 {dimension_numbers = #tpu.dot_dimension_numbers<[1], [0], [0], [1], [0, 0, 1, 1], [], []>} : vector<32x32xbf16>, vector<32x256xbf16>, vector<32x256xf32> -> vector<32x256xf32>
    %cst_31 = arith.constant 0.000000e+00 : f32
    %53 = vector.broadcast %cst_31 : f32 to vector<32x256xf32>
    %54 = arith.select %22, %52, %53 : vector<32x256xi1>, vector<32x256xf32>
    %55 = arith.addf %48, %54 : vector<32x256xf32>
    %c0_32 = arith.constant 0 : index
    %c128_33 = arith.constant 128 : index
    %56 = vector.load %arg11[%c0_32, %c128_33] : memref<32x512xbf16, #tpu.memory_space<vmem>>, vector<32x256xbf16>
    %c4 = arith.constant 4 : index
    %c0_34 = arith.constant 0 : index
    %c0_35 = arith.constant 0 : index
    %57 = vector.load %arg2[%c4, %c0_34, %c0_35] : memref<9x32x32xbf16, #tpu.memory_space<vmem>>, vector<1x32x32xbf16>
    %58 = vector.shape_cast %57 : vector<1x32x32xbf16> to vector<32x32xbf16>
    %cst_36 = arith.constant dense<0.000000e+00> : vector<32x256xf32>
    %59 = tpu.matmul %58, %56, %cst_36 {dimension_numbers = #tpu.dot_dimension_numbers<[1], [0], [0], [1], [0, 0, 1, 1], [], []>} : vector<32x32xbf16>, vector<32x256xbf16>, vector<32x256xf32> -> vector<32x256xf32>
    %60 = arith.addf %55, %59 : vector<32x256xf32>
    %c0_37 = arith.constant 0 : index
    %c129 = arith.constant 129 : index
    %61 = vector.load %arg11[%c0_37, %c129] : memref<32x512xbf16, #tpu.memory_space<vmem>>, vector<32x256xbf16>
    %c5 = arith.constant 5 : index
    %c0_38 = arith.constant 0 : index
    %c0_39 = arith.constant 0 : index
    %62 = vector.load %arg2[%c5, %c0_38, %c0_39] : memref<9x32x32xbf16, #tpu.memory_space<vmem>>, vector<1x32x32xbf16>
    %63 = vector.shape_cast %62 : vector<1x32x32xbf16> to vector<32x32xbf16>
    %cst_40 = arith.constant dense<0.000000e+00> : vector<32x256xf32>
    %64 = tpu.matmul %63, %61, %cst_40 {dimension_numbers = #tpu.dot_dimension_numbers<[1], [0], [0], [1], [0, 0, 1, 1], [], []>} : vector<32x32xbf16>, vector<32x256xbf16>, vector<32x256xf32> -> vector<32x256xf32>
    %cst_41 = arith.constant 0.000000e+00 : f32
    %65 = vector.broadcast %cst_41 : f32 to vector<32x256xf32>
    %66 = arith.select %24, %64, %65 : vector<32x256xi1>, vector<32x256xf32>
    %67 = arith.addf %60, %66 : vector<32x256xf32>
    %c0_42 = arith.constant 0 : index
    %c143 = arith.constant 143 : index
    %68 = vector.load %arg11[%c0_42, %c143] : memref<32x512xbf16, #tpu.memory_space<vmem>>, vector<32x256xbf16>
    %c6 = arith.constant 6 : index
    %c0_43 = arith.constant 0 : index
    %c0_44 = arith.constant 0 : index
    %69 = vector.load %arg2[%c6, %c0_43, %c0_44] : memref<9x32x32xbf16, #tpu.memory_space<vmem>>, vector<1x32x32xbf16>
    %70 = vector.shape_cast %69 : vector<1x32x32xbf16> to vector<32x32xbf16>
    %cst_45 = arith.constant dense<0.000000e+00> : vector<32x256xf32>
    %71 = tpu.matmul %70, %68, %cst_45 {dimension_numbers = #tpu.dot_dimension_numbers<[1], [0], [0], [1], [0, 0, 1, 1], [], []>} : vector<32x32xbf16>, vector<32x256xbf16>, vector<32x256xf32> -> vector<32x256xf32>
    %cst_46 = arith.constant 0.000000e+00 : f32
    %72 = vector.broadcast %cst_46 : f32 to vector<32x256xf32>
    %73 = arith.select %22, %71, %72 : vector<32x256xi1>, vector<32x256xf32>
    %74 = arith.addf %67, %73 : vector<32x256xf32>
    %c0_47 = arith.constant 0 : index
    %c144 = arith.constant 144 : index
    %75 = vector.load %arg11[%c0_47, %c144] : memref<32x512xbf16, #tpu.memory_space<vmem>>, vector<32x256xbf16>
    %c7 = arith.constant 7 : index
    %c0_48 = arith.constant 0 : index
    %c0_49 = arith.constant 0 : index
    %76 = vector.load %arg2[%c7, %c0_48, %c0_49] : memref<9x32x32xbf16, #tpu.memory_space<vmem>>, vector<1x32x32xbf16>
    %77 = vector.shape_cast %76 : vector<1x32x32xbf16> to vector<32x32xbf16>
    %cst_50 = arith.constant dense<0.000000e+00> : vector<32x256xf32>
    %78 = tpu.matmul %77, %75, %cst_50 {dimension_numbers = #tpu.dot_dimension_numbers<[1], [0], [0], [1], [0, 0, 1, 1], [], []>} : vector<32x32xbf16>, vector<32x256xbf16>, vector<32x256xf32> -> vector<32x256xf32>
    %79 = arith.addf %74, %78 : vector<32x256xf32>
    %c0_51 = arith.constant 0 : index
    %c145 = arith.constant 145 : index
    %80 = vector.load %arg11[%c0_51, %c145] : memref<32x512xbf16, #tpu.memory_space<vmem>>, vector<32x256xbf16>
    %c8 = arith.constant 8 : index
    %c0_52 = arith.constant 0 : index
    %c0_53 = arith.constant 0 : index
    %81 = vector.load %arg2[%c8, %c0_52, %c0_53] : memref<9x32x32xbf16, #tpu.memory_space<vmem>>, vector<1x32x32xbf16>
    %82 = vector.shape_cast %81 : vector<1x32x32xbf16> to vector<32x32xbf16>
    %cst_54 = arith.constant dense<0.000000e+00> : vector<32x256xf32>
    %83 = tpu.matmul %82, %80, %cst_54 {dimension_numbers = #tpu.dot_dimension_numbers<[1], [0], [0], [1], [0, 0, 1, 1], [], []>} : vector<32x32xbf16>, vector<32x256xbf16>, vector<32x256xf32> -> vector<32x256xf32>
    %cst_55 = arith.constant 0.000000e+00 : f32
    %84 = vector.broadcast %cst_55 : f32 to vector<32x256xf32>
    %85 = arith.select %24, %83, %84 : vector<32x256xi1>, vector<32x256xf32>
    %86 = arith.addf %79, %85 : vector<32x256xf32>
    %c0_56 = arith.constant 0 : index
    %c0_57 = arith.constant 0 : index
    %87 = vector.load %arg3[%c0_56, %c0_57] : memref<32x1xf32, #tpu.memory_space<vmem>>, vector<32x1xf32>
    %88 = vector.broadcast %87 : vector<32x1xf32> to vector<32x256xf32>
    %89 = arith.addf %86, %88 : vector<32x256xf32>
    %cst_58 = arith.constant 0.000000e+00 : f32
    %90 = vector.broadcast %cst_58 : f32 to vector<32x256xf32>
    %91 = arith.maximumf %89, %90 : vector<32x256xf32>
    %92 = arith.truncf %91 : vector<32x256xf32> to vector<32x256xbf16>
    %c0_59 = arith.constant 0 : index
    %c128_60 = arith.constant 128 : index
    %93 = vector.load %arg11[%c0_59, %c128_60] : memref<32x512xbf16, #tpu.memory_space<vmem>>, vector<32x256xbf16>
    tpu.vector_store %arg11[%c0_59, %c128_60], %92 {strides = array<i32>} : memref<32x512xbf16, #tpu.memory_space<vmem>>, vector<32x256xbf16>,
    %cst_61 = arith.constant 0.000000e+00 : f32
    %94 = vector.broadcast %cst_61 : f32 to vector<32x256xf32>
    %c0_62 = arith.constant 0 : index
    %c111_63 = arith.constant 111 : index
    %95 = vector.load %arg11[%c0_62, %c111_63] : memref<32x512xbf16, #tpu.memory_space<vmem>>, vector<32x256xbf16>
    %c0_64 = arith.constant 0 : index
    %c0_65 = arith.constant 0 : index
    %c0_66 = arith.constant 0 : index
    %96 = vector.load %arg4[%c0_64, %c0_65, %c0_66] : memref<9x32x32xbf16, #tpu.memory_space<vmem>>, vector<1x32x32xbf16>
    %97 = vector.shape_cast %96 : vector<1x32x32xbf16> to vector<32x32xbf16>
    %cst_67 = arith.constant dense<0.000000e+00> : vector<32x256xf32>
    %98 = tpu.matmul %97, %95, %cst_67 {dimension_numbers = #tpu.dot_dimension_numbers<[1], [0], [0], [1], [0, 0, 1, 1], [], []>} : vector<32x32xbf16>, vector<32x256xbf16>, vector<32x256xf32> -> vector<32x256xf32>
    %cst_68 = arith.constant 0.000000e+00 : f32
    %99 = vector.broadcast %cst_68 : f32 to vector<32x256xf32>
    %100 = arith.select %22, %98, %99 : vector<32x256xi1>, vector<32x256xf32>
    %101 = arith.addf %94, %100 : vector<32x256xf32>
    %c0_69 = arith.constant 0 : index
    %c112_70 = arith.constant 112 : index
    %102 = vector.load %arg11[%c0_69, %c112_70] : memref<32x512xbf16, #tpu.memory_space<vmem>>, vector<32x256xbf16>
    %c1_71 = arith.constant 1 : index
    %c0_72 = arith.constant 0 : index
    %c0_73 = arith.constant 0 : index
    %103 = vector.load %arg4[%c1_71, %c0_72, %c0_73] : memref<9x32x32xbf16, #tpu.memory_space<vmem>>, vector<1x32x32xbf16>
    %104 = vector.shape_cast %103 : vector<1x32x32xbf16> to vector<32x32xbf16>
    %cst_74 = arith.constant dense<0.000000e+00> : vector<32x256xf32>
    %105 = tpu.matmul %104, %102, %cst_74 {dimension_numbers = #tpu.dot_dimension_numbers<[1], [0], [0], [1], [0, 0, 1, 1], [], []>} : vector<32x32xbf16>, vector<32x256xbf16>, vector<32x256xf32> -> vector<32x256xf32>
    %106 = arith.addf %101, %105 : vector<32x256xf32>
    %c0_75 = arith.constant 0 : index
    %c113_76 = arith.constant 113 : index
    %107 = vector.load %arg11[%c0_75, %c113_76] : memref<32x512xbf16, #tpu.memory_space<vmem>>, vector<32x256xbf16>
    %c2_77 = arith.constant 2 : index
    %c0_78 = arith.constant 0 : index
    %c0_79 = arith.constant 0 : index
    %108 = vector.load %arg4[%c2_77, %c0_78, %c0_79] : memref<9x32x32xbf16, #tpu.memory_space<vmem>>, vector<1x32x32xbf16>
    %109 = vector.shape_cast %108 : vector<1x32x32xbf16> to vector<32x32xbf16>
    %cst_80 = arith.constant dense<0.000000e+00> : vector<32x256xf32>
    %110 = tpu.matmul %109, %107, %cst_80 {dimension_numbers = #tpu.dot_dimension_numbers<[1], [0], [0], [1], [0, 0, 1, 1], [], []>} : vector<32x32xbf16>, vector<32x256xbf16>, vector<32x256xf32> -> vector<32x256xf32>
    %cst_81 = arith.constant 0.000000e+00 : f32
    %111 = vector.broadcast %cst_81 : f32 to vector<32x256xf32>
    %112 = arith.select %24, %110, %111 : vector<32x256xi1>, vector<32x256xf32>
    %113 = arith.addf %106, %112 : vector<32x256xf32>
    %c0_82 = arith.constant 0 : index
    %c127_83 = arith.constant 127 : index
    %114 = vector.load %arg11[%c0_82, %c127_83] : memref<32x512xbf16, #tpu.memory_space<vmem>>, vector<32x256xbf16>
    %c3_84 = arith.constant 3 : index
    %c0_85 = arith.constant 0 : index
    %c0_86 = arith.constant 0 : index
    %115 = vector.load %arg4[%c3_84, %c0_85, %c0_86] : memref<9x32x32xbf16, #tpu.memory_space<vmem>>, vector<1x32x32xbf16>
    %116 = vector.shape_cast %115 : vector<1x32x32xbf16> to vector<32x32xbf16>
    %cst_87 = arith.constant dense<0.000000e+00> : vector<32x256xf32>
    %117 = tpu.matmul %116, %114, %cst_87 {dimension_numbers = #tpu.dot_dimension_numbers<[1], [0], [0], [1], [0, 0, 1, 1], [], []>} : vector<32x32xbf16>, vector<32x256xbf16>, vector<32x256xf32> -> vector<32x256xf32>
    %cst_88 = arith.constant 0.000000e+00 : f32
    %118 = vector.broadcast %cst_88 : f32 to vector<32x256xf32>
    %119 = arith.select %22, %117, %118 : vector<32x256xi1>, vector<32x256xf32>
    %120 = arith.addf %113, %119 : vector<32x256xf32>
    %c0_89 = arith.constant 0 : index
    %c128_90 = arith.constant 128 : index
    %121 = vector.load %arg11[%c0_89, %c128_90] : memref<32x512xbf16, #tpu.memory_space<vmem>>, vector<32x256xbf16>
    %c4_91 = arith.constant 4 : index
    %c0_92 = arith.constant 0 : index
    %c0_93 = arith.constant 0 : index
    %122 = vector.load %arg4[%c4_91, %c0_92, %c0_93] : memref<9x32x32xbf16, #tpu.memory_space<vmem>>, vector<1x32x32xbf16>
    %123 = vector.shape_cast %122 : vector<1x32x32xbf16> to vector<32x32xbf16>
    %cst_94 = arith.constant dense<0.000000e+00> : vector<32x256xf32>
    %124 = tpu.matmul %123, %121, %cst_94 {dimension_numbers = #tpu.dot_dimension_numbers<[1], [0], [0], [1], [0, 0, 1, 1], [], []>} : vector<32x32xbf16>, vector<32x256xbf16>, vector<32x256xf32> -> vector<32x256xf32>
    %125 = arith.addf %120, %124 : vector<32x256xf32>
    %c0_95 = arith.constant 0 : index
    %c129_96 = arith.constant 129 : index
    %126 = vector.load %arg11[%c0_95, %c129_96] : memref<32x512xbf16, #tpu.memory_space<vmem>>, vector<32x256xbf16>
    %c5_97 = arith.constant 5 : index
    %c0_98 = arith.constant 0 : index
    %c0_99 = arith.constant 0 : index
    %127 = vector.load %arg4[%c5_97, %c0_98, %c0_99] : memref<9x32x32xbf16, #tpu.memory_space<vmem>>, vector<1x32x32xbf16>
    %128 = vector.shape_cast %127 : vector<1x32x32xbf16> to vector<32x32xbf16>
    %cst_100 = arith.constant dense<0.000000e+00> : vector<32x256xf32>
    %129 = tpu.matmul %128, %126, %cst_100 {dimension_numbers = #tpu.dot_dimension_numbers<[1], [0], [0], [1], [0, 0, 1, 1], [], []>} : vector<32x32xbf16>, vector<32x256xbf16>, vector<32x256xf32> -> vector<32x256xf32>
    %cst_101 = arith.constant 0.000000e+00 : f32
    %130 = vector.broadcast %cst_101 : f32 to vector<32x256xf32>
    %131 = arith.select %24, %129, %130 : vector<32x256xi1>, vector<32x256xf32>
    %132 = arith.addf %125, %131 : vector<32x256xf32>
    %c0_102 = arith.constant 0 : index
    %c143_103 = arith.constant 143 : index
    %133 = vector.load %arg11[%c0_102, %c143_103] : memref<32x512xbf16, #tpu.memory_space<vmem>>, vector<32x256xbf16>
    %c6_104 = arith.constant 6 : index
    %c0_105 = arith.constant 0 : index
    %c0_106 = arith.constant 0 : index
    %134 = vector.load %arg4[%c6_104, %c0_105, %c0_106] : memref<9x32x32xbf16, #tpu.memory_space<vmem>>, vector<1x32x32xbf16>
    %135 = vector.shape_cast %134 : vector<1x32x32xbf16> to vector<32x32xbf16>
    %cst_107 = arith.constant dense<0.000000e+00> : vector<32x256xf32>
    %136 = tpu.matmul %135, %133, %cst_107 {dimension_numbers = #tpu.dot_dimension_numbers<[1], [0], [0], [1], [0, 0, 1, 1], [], []>} : vector<32x32xbf16>, vector<32x256xbf16>, vector<32x256xf32> -> vector<32x256xf32>
    %cst_108 = arith.constant 0.000000e+00 : f32
    %137 = vector.broadcast %cst_108 : f32 to vector<32x256xf32>
    %138 = arith.select %22, %136, %137 : vector<32x256xi1>, vector<32x256xf32>
    %139 = arith.addf %132, %138 : vector<32x256xf32>
    %c0_109 = arith.constant 0 : index
    %c144_110 = arith.constant 144 : index
    %140 = vector.load %arg11[%c0_109, %c144_110] : memref<32x512xbf16, #tpu.memory_space<vmem>>, vector<32x256xbf16>
    %c7_111 = arith.constant 7 : index
    %c0_112 = arith.constant 0 : index
    %c0_113 = arith.constant 0 : index
    %141 = vector.load %arg4[%c7_111, %c0_112, %c0_113] : memref<9x32x32xbf16, #tpu.memory_space<vmem>>, vector<1x32x32xbf16>
    %142 = vector.shape_cast %141 : vector<1x32x32xbf16> to vector<32x32xbf16>
    %cst_114 = arith.constant dense<0.000000e+00> : vector<32x256xf32>
    %143 = tpu.matmul %142, %140, %cst_114 {dimension_numbers = #tpu.dot_dimension_numbers<[1], [0], [0], [1], [0, 0, 1, 1], [], []>} : vector<32x32xbf16>, vector<32x256xbf16>, vector<32x256xf32> -> vector<32x256xf32>
    %144 = arith.addf %139, %143 : vector<32x256xf32>
    %c0_115 = arith.constant 0 : index
    %c145_116 = arith.constant 145 : index
    %145 = vector.load %arg11[%c0_115, %c145_116] : memref<32x512xbf16, #tpu.memory_space<vmem>>, vector<32x256xbf16>
    %c8_117 = arith.constant 8 : index
    %c0_118 = arith.constant 0 : index
    %c0_119 = arith.constant 0 : index
    %146 = vector.load %arg4[%c8_117, %c0_118, %c0_119] : memref<9x32x32xbf16, #tpu.memory_space<vmem>>, vector<1x32x32xbf16>
    %147 = vector.shape_cast %146 : vector<1x32x32xbf16> to vector<32x32xbf16>
    %cst_120 = arith.constant dense<0.000000e+00> : vector<32x256xf32>
    %148 = tpu.matmul %147, %145, %cst_120 {dimension_numbers = #tpu.dot_dimension_numbers<[1], [0], [0], [1], [0, 0, 1, 1], [], []>} : vector<32x32xbf16>, vector<32x256xbf16>, vector<32x256xf32> -> vector<32x256xf32>
    %cst_121 = arith.constant 0.000000e+00 : f32
    %149 = vector.broadcast %cst_121 : f32 to vector<32x256xf32>
    %150 = arith.select %24, %148, %149 : vector<32x256xi1>, vector<32x256xf32>
    %151 = arith.addf %144, %150 : vector<32x256xf32>
    %c0_122 = arith.constant 0 : index
    %c0_123 = arith.constant 0 : index
    %152 = vector.load %arg5[%c0_122, %c0_123] : memref<32x1xf32, #tpu.memory_space<vmem>>, vector<32x1xf32>
    %153 = vector.broadcast %152 : vector<32x1xf32> to vector<32x256xf32>
    %154 = arith.addf %151, %153 : vector<32x256xf32>
    %cst_124 = arith.constant dense<0.000000e+00> : vector<32xf32>
    %155 = vector.multi_reduction <add>, %154, %cst_124 [1] : vector<32x256xf32> to vector<32xf32>
    %156 = vector.shape_cast %155 : vector<32xf32> to vector<32x1xf32>
    %cst_125 = arith.constant 2.560000e+02 : f32
    %157 = vector.broadcast %cst_125 : f32 to vector<32x1xf32>
    %158 = arith.divf %156, %157 : vector<32x1xf32>
    %c0_126 = arith.constant 0 : index
    %c0_127 = arith.constant 0 : index
    %159 = vector.load %arg6[%c0_126, %c0_127] : memref<32x2xf32, #tpu.memory_space<vmem>>, vector<32x2xf32>
    %160 = vector.broadcast %158 : vector<32x1xf32> to vector<32x2xf32>
    %161 = arith.mulf %160, %159 : vector<32x2xf32>
    %cst_128 = arith.constant dense<0.000000e+00> : vector<2xf32>
    %162 = vector.multi_reduction <add>, %161, %cst_128 [0] : vector<32x2xf32> to vector<2xf32>
    %163 = vector.shape_cast %162 : vector<2xf32> to vector<1x2xf32>
    %c0_129 = arith.constant 0 : index
    %c0_130 = arith.constant 0 : index
    %164 = vector.load %arg7[%c0_129, %c0_130] : memref<1x2xf32, #tpu.memory_space<vmem>>, vector<1x2xf32>
    %165 = arith.addf %163, %164 : vector<1x2xf32>
    %cst_131 = arith.constant 0.000000e+00 : f32
    %166 = vector.broadcast %cst_131 : f32 to vector<1x2xf32>
    %167 = arith.maximumf %165, %166 : vector<1x2xf32>
    %c0_132 = arith.constant 0 : index
    %c0_133 = arith.constant 0 : index
    %168 = vector.load %arg8[%c0_132, %c0_133] : memref<32x2xf32, #tpu.memory_space<vmem>>, vector<32x2xf32>
    %169 = vector.broadcast %167 : vector<1x2xf32> to vector<32x2xf32>
    %170 = arith.mulf %169, %168 : vector<32x2xf32>
    %cst_134 = arith.constant dense<0.000000e+00> : vector<32xf32>
    %171 = vector.multi_reduction <add>, %170, %cst_134 [1] : vector<32x2xf32> to vector<32xf32>
    %172 = vector.shape_cast %171 : vector<32xf32> to vector<32x1xf32>
    %c0_135 = arith.constant 0 : index
    %c0_136 = arith.constant 0 : index
    %173 = vector.load %arg9[%c0_135, %c0_136] : memref<32x1xf32, #tpu.memory_space<vmem>>, vector<32x1xf32>
    %174 = arith.addf %172, %173 : vector<32x1xf32>
    %175 = arith.negf %174 : vector<32x1xf32>
    %176 = math.exp %175 : vector<32x1xf32>
    %cst_137 = arith.constant 1.000000e+00 : f32
    %177 = vector.broadcast %cst_137 : f32 to vector<32x1xf32>
    %178 = arith.addf %177, %176 : vector<32x1xf32>
    %179 = arith.divf %177, %178 : vector<32x1xf32>
    %180 = vector.broadcast %179 : vector<32x1xf32> to vector<32x256xf32>
    %181 = arith.mulf %154, %180 : vector<32x256xf32>
    %cst_138 = arith.constant 1.000000e+00 : f32
    %182 = vector.broadcast %cst_138 : f32 to vector<32x256xf32>
    %183 = arith.mulf %182, %181 : vector<32x256xf32>
    %184 = arith.addf %26, %183 : vector<32x256xf32>
    %c0_139 = arith.constant 0 : index
    %c0_140 = arith.constant 0 : index
    %c0_141 = arith.constant 0 : index
    %185 = vector.load %arg10[%c0_139, %c0_140, %c0_141] : memref<1x32x256xf32, #tpu.memory_space<vmem>>, vector<1x32x256xf32>
    %186 = vector.shape_cast %185 : vector<1x32x256xf32> to vector<32x256xf32>
    %187 = vector.shape_cast %184 : vector<32x256xf32> to vector<1x32x256xf32>
    tpu.vector_store %arg10[%c0_139, %c0_140, %c0_141], %187 {strides = array<i32>} : memref<1x32x256xf32, #tpu.memory_space<vmem>>, vector<1x32x256xf32>,
    return
  }
  func.func @transform_0(%arg0: i32) -> (i32, i32, i32) {
    %c0_i32 = arith.constant 0 : i32
    %c0_i32_0 = arith.constant 0 : i32
    %c0_i32_1 = arith.constant 0 : i32
    return %arg0, %c0_i32, %c0_i32_0 : i32, i32, i32
  }
  func.func @transform_1(%arg0: i32) -> (i32, i32, i32) {
    %c0_i32 = arith.constant 0 : i32
    %c0_i32_0 = arith.constant 0 : i32
    %c0_i32_1 = arith.constant 0 : i32
    %c0_i32_2 = arith.constant 0 : i32
    return %c0_i32, %c0_i32_0, %c0_i32_1 : i32, i32, i32
  }
  func.func @transform_2(%arg0: i32) -> (i32, i32) {
    %c0_i32 = arith.constant 0 : i32
    %c0_i32_0 = arith.constant 0 : i32
    %c0_i32_1 = arith.constant 0 : i32
    return %c0_i32, %c0_i32_0 : i32, i32
  }
  func.func @transform_3(%arg0: i32) -> (i32, i32, i32) {
    %c0_i32 = arith.constant 0 : i32
    %c0_i32_0 = arith.constant 0 : i32
    %c0_i32_1 = arith.constant 0 : i32
    %c0_i32_2 = arith.constant 0 : i32
    return %c0_i32, %c0_i32_0, %c0_i32_1 : i32, i32, i32
  }
  func.func @transform_4(%arg0: i32) -> (i32, i32) {
    %c0_i32 = arith.constant 0 : i32
    %c0_i32_0 = arith.constant 0 : i32
    %c0_i32_1 = arith.constant 0 : i32
    return %c0_i32, %c0_i32_0 : i32, i32
  }
  func.func @transform_5(%arg0: i32) -> (i32, i32) {
    %c0_i32 = arith.constant 0 : i32
    %c0_i32_0 = arith.constant 0 : i32
    %c0_i32_1 = arith.constant 0 : i32
    return %c0_i32, %c0_i32_0 : i32, i32
  }
  func.func @transform_6(%arg0: i32) -> (i32, i32) {
    %c0_i32 = arith.constant 0 : i32
    %c0_i32_0 = arith.constant 0 : i32
    %c0_i32_1 = arith.constant 0 : i32
    return %c0_i32, %c0_i32_0 : i32, i32
  }
  func.func @transform_7(%arg0: i32) -> (i32, i32) {
    %c0_i32 = arith.constant 0 : i32
    %c0_i32_0 = arith.constant 0 : i32
    %c0_i32_1 = arith.constant 0 : i32
    return %c0_i32, %c0_i32_0 : i32, i32
  }
  func.func @transform_8(%arg0: i32) -> (i32, i32) {
    %c0_i32 = arith.constant 0 : i32
    %c0_i32_0 = arith.constant 0 : i32
    %c0_i32_1 = arith.constant 0 : i32
    return %c0_i32, %c0_i32_0 : i32, i32
  }
  func.func @transform_9(%arg0: i32) -> (i32, i32, i32) {
    %c0_i32 = arith.constant 0 : i32
    %c0_i32_0 = arith.constant 0 : i32
    %c0_i32_1 = arith.constant 0 : i32
    return %arg0, %c0_i32, %c0_i32_0 : i32, i32, i32
  }
}

</mosaic_0001>

<bundles_post_ra>
// kernel: tpu_custom_call.1
= control target key start
LH: loop header
LB: loop body
LE: loop exit
PB: predicated region body
PF: predicated region fallthrough
CT: control target
= control target key end

     0   :  { %14 = vsyncpa [#allocation4], 0  ;;  %s4239_s0 = inlined_call_operand.hbm [shape: f32[2,32,256], index: 0, kind: input, shape index: {}]   ;;  %s4240_s1 = inlined_call_operand.vmem [shape: bf16[9,32,32], index: 1, kind: input, shape index: {}]   ;;  %s4241_s2 = inlined_call_operand.vmem [shape: f32[32,1], index: 2, kind: input, shape index: {}]   ;;  %s4242_s3 = inlined_call_operand.hbm [shape: bf16[9,32,32], index: 3, kind: input, shape index: {}]   ;;  %s4243_s4 = inlined_call_operand.vmem [shape: f32[32,1], index: 4, kind: input, shape index: {}]   ;;  %s4244_s5 = inlined_call_operand.vmem [shape: f32[32,2], index: 5, kind: input, shape index: {}]   ;;  %s4245_s6 = inlined_call_operand.vmem [shape: f32[1,2], index: 6, kind: input, shape index: {}]   ;;  %s4246_s7 = inlined_call_operand.vmem [shape: f32[32,2], index: 7, kind: input, shape index: {}]   ;;  %s4247_s8 = inlined_call_operand.vmem [shape: f32[32,1], index: 8, kind: input, shape index: {}]   ;;  %s4248_s9 = inlined_call_operand.hbm [shape: f32[2,32,256], index: 9, kind: output, shape index: {}]  }
   0x1   :  { %16 = vsyncpa [#allocation4 + $0x1], 0 }
   0x2   :  { %17 = vsyncpa [#allocation7], 0 }
   0x3   :  { %18 = vsyncpa [#allocation5], 0 }
   0x4   :  { %20 = vsyncpa [#allocation5 + $0x1], 0  ;;  %s3322_s30 = smov 0   ;;  %s3324_s10 = smov 0  }
   0x5   :  { %s3326_s11 = smov 0   ;;  %s3328_s12 = smov 0  }
   0x6 LB: > { %s3343_s13 = sadd.s32 4294967295, %s3253_s12   ;;  %s2684_s14 = sadd.s32 4294967294, %s3253_s12   ;;  %s3253_s12 = sphi %s3328_s12, %s4293_s12   ;;  %s3249_s11 = sphi %s3326_s11, %s4296_s11   ;;  %s3245_s10 = sphi %s3324_s10, %s4295_s10   ;;  %s3241_s30 = sphi %s3322_s30, %s4294_s30  }
   0x7   : > { %p46_p0 = scmp.ne.s32.totalorder %s3245_s10, %s3241_s30  ;;  %p4249_p1 = scmp.eq.s32.totalorder %s3343_s13, 0 }
   0x8   : > { %p244_p3 = scmp.eq.s32.totalorder %s2684_s14, 1  ;;  %p2685_p5 = scmp.ge.s32.totalorder %s3253_s12, 1 }
   0x9   : > { %p3352_p4 = por %p4249_p1, %p46_p0  ;;  %p251_p7 = scmp.lt.s32.totalorder %s3253_s12, 3 }
   0xa   : > { %p3357_p6 = por %p244_p3, %p46_p0  ;;  %s3255_s18 = smov [#allocation6]  }
   0xb   : > { %s4264_s15 = scalar_select %p3352_p4, 1, 0 }
   0xc   : > { %s4265_s16 = scalar_select %p3357_p6, 1, 0 }
   0xd   : > { %p3362_p8 = pnand %p2685_p5, %p251_p7  ;;  %s269_s19 = sshll.u32 %s3255_s18, 4  ;;  %s3366_s19 = int_to_ptr.vmem [resolvable:$true] %s269_s19 }
   0xe   : > { %4266 = sst [smem:[#allocation12_spill]] %s4265_s16  ;;  %s3378_s21 = sadd.s32 1, %s3253_s12  }
   0xf   : > { %s4267_s17 = scalar_select %p3362_p8, 1, 0 }
  0x10   : > { %p2930_p9 = pneg %p3362_p8  ;;  %4269 = sst [smem:[#allocation13_spill]] %s3378_s21 }
  0x11   : > { %s33_s22 = sadd.s32 1, %s3249_s11  ;;  %s30_s23 = ssub.s32 %s3253_s12, %s3378_s21 }
  0x12   : > { %p3373_p11 = pnand %p2930_p9, %p4249_p1  ;;  %s3125_s26 = scalar_lea.hbm %s4242_s3, 2304 }
  0x13   : > { %p3126_p12 = scmp.ne.s32.totalorder %s4242_s3, %s3125_s26  ;;  %p3132_p5 = scmp.lt.u32.totalorder %s3125_s26, %s4242_s3 }
  0x14   : > { %p3127_p13 = pneg %p3373_p11 }
  0x16   : > { %p3128_p0 = pnand %p3127_p13, %p3126_p12 }
  0x18   : > { %p3129_p3 = pneg %p3128_p0 }
  0x1a   : > { %p3134_p7 = pnand %p3132_p5, %p3129_p3 }
  0x1c   : > { %3137 = shalt.err (!%p3134_p7)
}
  0x1d   : > { %s3138_s18 = scalar_lea.vmem %s3366_s19, 2304  ;;  %p3146_p2 = scmp.lt.s32.totalorder %s3366_s19, %s3366_s19 }
  0x1e   : > { %p3139_p9 = scmp.ne.s32.totalorder %s3366_s19, %s3138_s18  ;;  %p3147_p6 = scmp.lt.s32.totalorder %s3138_s18, %s3138_s18 }
  0x20   : > { %p3141_p10 = pnand %p3139_p9, %p3127_p13  ;;  %p3148_p4 = por %p3147_p6, %p3146_p2 }
  0x22   : > { %p3142_p1 = pneg %p3141_p10 }
  0x24   : > { %p3149_p8 = pnand %p3148_p4, %p3142_p1 }
  0x26   : > { %3152 = shalt.err (!%p3149_p8)
}
  0x27   : > { %s3256_s24 = smov 64   ;;  %s3257_s25 = smov 4  }
  0x28   : > { %2933 = dma.hbm_to_vmem [thread:$0]  (!%p3373_p11), %s4242_s3, 2304, %s3366_s19, [#allocation7], %s3256_s24, %s3256_s24, %s3257_s25  }
  0x29   : > { %p31_p2 = scmp.eq.s32.totalorder %s30_s23, 0  ;;  %p40_p1 = scmp.ne.s32.totalorder %s3249_s11, %s3245_s10 }
  0x2a   : > { %p41_p4 = scmp.eq.s32.totalorder %s3253_s12, 0  ;;  %p2943_p6 = scmp.lt.s32.totalorder %s3253_s12, 2 }
  0x2b   : > { %s3409_s28 = scalar_select %p31_p2, %s3249_s11, %s33_s22  }
  0x2c   : > { %p42_p8 = por %p41_p4, %p40_p1  ;;  %p4270_p10 = scmp.eq.s32.totalorder %s3343_s13, 1 }
  0x2d   : > { %s298_s14 = sand.u32 1, %s3249_s11   ;;  %s2808_s18 = sshll.u32 %s3253_s12, 10 }
  0x2e   : > { %p3413_p12 = por %p4270_p10, %p40_p1  ;;  %s2688_s21 = sshll.u32 %s298_s14, 6 }
  0x2f   : > { %s3422_s26 = scalar_lea.hbm %s4239_s0, %s2808_s18  ;;  %s302_s19 = scalar_lea.vmem [#allocation3], %s2688_s21 }
  0x30   : > { %s309_s22 = sshll.u32 %s302_s19, 4  ;;  %p3424_p11 = pnand %p2943_p6, %p42_p8  ;;  %s3428_s22 = int_to_ptr.vmem [resolvable:$true] %s309_s22 }
  0x31   : > { %s3430_s24 = scalar_lea.sflag [#allocation4], %s298_s14  ;;  %s3153_s25 = scalar_lea.hbm %s3422_s26, 1024 }
  0x32   : > { %p3154_p13 = scmp.ne.s32.totalorder %s3422_s26, %s3153_s25  ;;  %p3155_p0 = pneg %p3424_p11 }
  0x33   : > { %s3158_s27 = scalar_lea.hbm %s4239_s0, 2048  ;;  %p3159_p7 = scmp.lt.u32.totalorder %s3422_s26, %s4239_s0 }
  0x34   : > { %p3156_p3 = pnand %p3155_p0, %p3154_p13  ;;  %p3160_p9 = scmp.lt.u32.totalorder %s3158_s27, %s3153_s25 }
  0x35   : > { %p3162_p1 = scmp.lt.u32.totalorder %s3153_s25, %s3422_s26 }
  0x36   : > { %p3157_p5 = pneg %p3156_p3  ;;  %p3161_p2 = por %p3160_p9, %p3159_p7 }
  0x38   : > { %p3163_p4 = por %p3162_p1, %p3161_p2 }
  0x3a   : > { %p3164_p6 = pnand %p3163_p4, %p3157_p5 }
  0x3c   : > { %3167 = shalt.err (!%p3164_p6)
}
  0x3d   : > { %s3168_s14 = scalar_lea.vmem %s3428_s22, 1024  ;;  %s3258_s19 = smov [#allocation3]  }
  0x3e   : > { %p3169_p8 = scmp.ne.s32.totalorder %s3428_s22, %s3168_s14  ;;  %s3173_s16 = sshll.u32 %s3258_s19, 4  ;;  %s3174_s16 = int_to_ptr.vmem [resolvable:$false] %s3173_s16 }
  0x3f   : > { %s3175_s21 = scalar_lea.vmem %s3174_s16, 2048  ;;  %p3176_p3 = scmp.lt.s32.totalorder %s3428_s22, %s3174_s16 }
  0x40   : > { %p3171_p10 = pnand %p3169_p8, %p3155_p0  ;;  %p3177_p7 = scmp.lt.s32.totalorder %s3175_s21, %s3168_s14 }
  0x42   : > { %p3172_p13 = pneg %p3171_p10  ;;  %p3178_p9 = por %p3177_p7, %p3176_p3 }
  0x44   : > { %p3179_p2 = pnand %p3178_p9, %p3172_p13 }
  0x46   : > { %3182 = shalt.err (!%p3179_p2)
}
  0x47   : > { %s3259_s25 = smov 256   ;;  %s3260_s27 = smov 16  }
  0x48   : > { %2937 = dma.hbm_to_vmem [thread:$0]  (!%p3424_p11), %s3422_s26, 1024, %s3428_s22, %s3430_s24, %s3259_s25, %s3259_s25, %s3260_s27  }
  0x49   : > { %p4273_p0 = scmp.ne.s32.totalorder %s4267_s17, 0 }
  0x4a   : > { %s3461_s18 = sand.u32 (!%p4273_p0), 1, %s3245_s10   ;;  %p4274_p5 = scmp.ne.s32.totalorder (!%p4273_p0), %s4264_s15, 0 }
  0x4b   : > { %321 = sbr.rel (%p4273_p0) target bundleno = 1432 (0x598), region = 56  ;;  %s4255_s20 = sshll.u32 (!%p4273_p0), %s3461_s18, 6 }
  0x4c   : > { %s324_s14 = scalar_lea.sflag (!%p4273_p0), [#allocation4], %s3461_s18  ;;  %s3467_s19 = scalar_lea.vmem (!%p4273_p0), [#allocation3], %s4255_s20 }
  0x52   : > { %3228 = dma.done.wait (%p4274_p5), %s324_s14, 1024  }
  0x53   : > { %3230 = vsyncadd (%p4274_p5), %s324_s14, 4294966272  ;;  %p4275_p11 = scmp.eq.s32.totalorder %s3343_s13, 0 }
  0x55   : > { %3232 = dma.done.wait (%p4275_p11), [#allocation7], 2304   ;;  %p4276_p1 = pmov %p4275_p11 }
  0x56   : > { %v3261_v0 = vmov 0   ;;  %s3262_s15 = smov 17   ;;  %v406_v1 = vld [vmem:[%s3467_s19 + $0x20] sm:$0xff]  ;;  %v408_v2 = vld [vmem:[%s3467_s19 + $0x30] sm:$0xff]  ;;  %v403_v6 = vld [vmem:[%s3467_s19 + $0x8] sm:$0xff]  ;;  %s3263_s17 = smov 16  }
  0x57   : > { %3234 = vsyncadd (%p4276_p1), [#allocation7], 4294964992  ;;  %504 = vmatprep.mubr.bf16.mxu0 %v3261_v0  ;;  %615 = vmatprep.mubr.bf16.mxu1 %v3261_v0  ;;  %v402_v3 = vld [vmem:[%s3467_s19] sm:$0xff]  ;;  %v3486_v4 = vpack.c.bf16 %v408_v2, %v406_v1  ;;  %v404_v5 = vld [vmem:[%s3467_s19 + $0x10] sm:$0xff]  ;;  %s3264_s26 = smov 15   ;;  %s4262_s22 = smov 1  }
  0x58   : > { %3028 = vset.pattern.permute.xlu1 %v3261_v0  ;;  %3029 = vset.pattern.permute.xlu0 %v3261_v0  ;;  %v405_v7 = vld [vmem:[%s3467_s19 + $0x18] sm:$0xff]  ;;  %v3491_v8 = vpack.c.bf16 %v404_v5, %v402_v3  ;;  %v407_v9 = vld [vmem:[%s3467_s19 + $0x28] sm:$0xff]  ;;  %s4258_s23 = smov 127   ;;  %s4256_s24 = smov 113   ;;  %v1396_v13 = vld [vmem:[%s4241_s2] sm:$0xff]  ;;  %vm456_vm0 = vcmask 138240  }
  0x59   : > { %2994 = vrot.lane.b32.xlu1 %v3261_v0, %s3262_s15  ;;  %v409_v10 = vld [vmem:[%s3467_s19 + $0x38] sm:$0xff]  ;;  %v3499_v11 = vpack.c.bf16 %v405_v7, %v403_v6  ;;  %s4260_s16 = smov 112   ;;  %s3269_s21 = smov 111   ;;  %v1398_v14 = vld [vmem:[%s4241_s2 + $0x10] sm:$0xff]  ;;  %v1397_v15 = vld [vmem:[%s4241_s2 + $0x8] sm:$0xff]  ;;  %vm568_vm1 = vcmask 130048  }
  0x5a   : > { %446 = vrot.lane.b32.xlu0 %v3491_v8, %s3262_s15  ;;  %v3505_v12 = vpack.c.bf16 %v409_v10, %v407_v9  ;;  %v1399_v16 = vld [vmem:[%s4241_s2 + $0x18] sm:$0xff]  ;;  %v3065_v31 = vld [vmem:[%s4240_s1] sm:$0xff]   ;;  %vm465_vm2 = vcmask 261120   ;;  %vm671_vm3 = vcmask 121856   ;;  %v3066_v39 = vld [vmem:[%s4240_s1 + $0x8] sm:$0xff]   ;;  %vm782_vm4 = vcmask 7168  }
  0x5b   : > { %v3067_v50 = vld [vmem:[%s4240_s1 + $0x10] sm:$0xff]   ;;  %v3068_v56 = vld [vmem:[%s4240_s1 + $0x20] sm:$0xff]   ;;  %vm987_vm5 = vcmask 1039360   ;;  %v3069_v62 = vld [vmem:[%s4240_s1 + $0x18] sm:$0xff]   ;;  %vm1098_vm6 = vcmask 924672   ;;  %vm1209_vm7 = vcmask 916480  }
  0x5c   : > { %v3070_v5 = vld [vmem:[%s4240_s1 + $0x28] sm:$0xff]   ;;  %vm1312_vm8 = vcmask 908288   ;;  %s4288_s25 = smov 112   ;;  %vm2470_vm13 = vcmask 15360   ;;  %s2809_s14 = sshll.u32 %s3343_s13, 10 }
  0x5d   : > { %452 = vrot.lane.b32.xlu1 %v3486_v4, %s3262_s15  ;;  %s4289_s20 = sshll.u32 %s3461_s18, 6 }
  0x5e   : > { %448 = vrot.lane.b32.xlu0 %v3499_v11, %s3262_s15 }
  0x61   : > { %558 = vrot.lane.b32.xlu1 %v3491_v8, %s3263_s17 }
  0x62   : > { %454 = vrot.lane.b32.xlu0 %v3505_v12, %s3262_s15 }
  0x65   : > { %2999 = vrot.lane.b32.xlu1 %v3261_v0, %s3263_s17 }
  0x66   : > { %560 = vrot.lane.b32.xlu0 %v3499_v11, %s3263_s17 }
  0x69   : > { %663 = vrot.lane.b32.xlu1 %v3499_v11, %s3264_s26 }
  0x6a   : > { %661 = vrot.lane.b32.xlu0 %v3491_v8, %s3264_s26 }
  0x6d   : > { %564 = vrot.lane.b32.xlu1 %v3486_v4, %s3263_s17 }
  0x6e   : > { %3004 = vrot.lane.b32.xlu0 %v3261_v0, %s3264_s26 }
  0x71   : > { %667 = vrot.lane.b32.xlu1 %v3486_v4, %s3264_s26 }
  0x72   : > { %566 = vrot.lane.b32.xlu0 %v3505_v12, %s3263_s17 }
  0x75   : > { %772 = vrot.lane.b32.xlu1 %v3491_v8, %s4262_s22 }
  0x76   : > { %669 = vrot.lane.b32.xlu0 %v3505_v12, %s3264_s26 }
  0x79   : > { %3009 = vrot.lane.b32.xlu1 %v3261_v0, %s4262_s22 }
  0x7a   : > { %774 = vrot.lane.b32.xlu0 %v3499_v11, %s4262_s22 }
  0x7d   : > { %3014 = vrot.lane.b32.xlu1 %v3261_v0, %s4258_s23 }
  0x7e   : > { %977 = vrot.lane.b32.xlu0 %v3499_v11, %s4258_s23 }
  0x81   : > { %778 = vrot.lane.b32.xlu1 %v3486_v4, %s4262_s22 }
  0x82   : > { %975 = vrot.lane.b32.xlu0 %v3491_v8, %s4258_s23 }
  0x85   : > { %983 = vrot.lane.b32.xlu1 %v3505_v12, %s4258_s23 }
  0x86   : > { %780 = vrot.lane.b32.xlu0 %v3505_v12, %s4262_s22  ;;  %s365_s22 = scalar_lea.vmem [#allocation8], %s4289_s20 }
  0x89   : > { %1088 = vrot.lane.b32.xlu1 %v3499_v11, %s4256_s24 }
  0x8a   : > { %981 = vrot.lane.b32.xlu0 %v3486_v4, %s4258_s23  ;;  %s2601_s23 = sshll.u32 %s365_s22, 4  ;;  %s4194_s23 = int_to_ptr.vmem [resolvable:$true] %s2601_s23 }
  0x8d   : > { %1086 = vrot.lane.b32.xlu1 %v3491_v8, %s4256_s24 }
  0x8e   : > { %3019 = vrot.lane.b32.xlu0 %v3261_v0, %s4256_s24 }
  0x91   : > { %1092 = vrot.lane.b32.xlu1 %v3486_v4, %s4256_s24 }
  0x92   : > { %1094 = vrot.lane.b32.xlu0 %v3505_v12, %s4256_s24 }
  0x95   : > { %3024 = vrot.lane.b32.xlu1 %v3261_v0, %s4260_s16 }
  0x96   : > { %1199 = vrot.lane.b32.xlu0 %v3499_v11, %s4260_s16 }
  0x99   : > { %1302 = vrot.lane.b32.xlu1 %v3499_v11, %s3269_s21 }
  0x9a   : > { %1197 = vrot.lane.b32.xlu0 %v3491_v8, %s4260_s16 }
  0x9d   : > { %1300 = vrot.lane.b32.xlu1 %v3491_v8, %s3269_s21 }
  0x9e   : > { %1304 = vrot.lane.b32.xlu0 %v3261_v0, %s3269_s21 }
  0xa1   : > { %1203 = vrot.lane.b32.xlu1 %v3486_v4, %s4260_s16 }
  0xa2   : > { %1205 = vrot.lane.b32.xlu0 %v3505_v12, %s4260_s16  ;;  %s4285_s16 = smov 1  }
  0xa5   : > { %1310 = vrot.lane.b32.xlu1 %v3261_v0, %s3269_s21 }
  0xa6   : > { %1308 = vrot.lane.b32.xlu0 %v3505_v12, %s3269_s21 }
  0xa9   : > { %1402 = vperm.xlu1 %3028, %v1396_v13  }
  0xaa   : > { %1306 = vrot.lane.b32.xlu0 %v3486_v4, %s3269_s21 }
  0xad   : > { %1412 = vperm.xlu1 %3028, %v1398_v14  }
  0xae   : > { %1407 = vperm.xlu0 %3029, %v1397_v15  }
  0xb1   : > { %1417 = vperm.xlu1 %3028, %v1399_v16  }
  0xb2   : > { %3031 = vrot.lane.b32.xlu0 %v3261_v0, %s3262_s15 }
  0xb5   : > { %3036 = vrot.lane.b32.xlu1 %v3261_v0, %s3263_s17 }
  0xcb   : > { %v2995_v17 = vpop.permute.xlu1 %2994 }
  0xcc   : > { %v447_v19 = vpop.permute.xlu0 %446  ;;  %v2996_v20 = vunpack.i.l.bf16 %v2995_v17  ;;  %v2997_v24 = vunpack.i.h.bf16 %v2995_v17 }
  0xce   : > { %v457_v25 = vsel %vm456_vm0, %v2996_v20, %v447_v19 }
  0xcf   : > { %v453_v18 = vpop.permute.xlu1 %452 }
  0xd0   : > { %v449_v22 = vpop.permute.xlu0 %448  ;;  %v459_v30 = vsel %vm456_vm0, %v2997_v24, %v453_v18 }
  0xd1   : > { %v458_v23 = vsel %vm456_vm0, %v447_v19, %v449_v22  ;;  %v3072_v22 = vld [vmem:[%s4240_s1 + $0x50] sm:$0xff]  }
  0xd2   : > { %472 = vmatprep.subr.bf16.mxu0 %v458_v23 }
  0xd3   : > { %v559_v21 = vpop.permute.xlu1 %558  ;;  %473 = vmatpush1.bf16.msra.mxu0 %v457_v25 }
  0xd4   : > { %v455_v27 = vpop.permute.xlu0 %454 }
  0xd5   : > { %v460_v28 = vsel %vm456_vm0, %v453_v18, %v455_v27  ;;  %v3071_v18 = vld [vmem:[%s4240_s1 + $0x30] sm:$0xff]  }
  0xd6   : > { %474 = vmatprep.subr.bf16.mxu0 %v460_v28 }
  0xd7   : > { %v3000_v26 = vpop.permute.xlu1 %2999  ;;  %475 = vmatpush1.bf16.msra.mxu0 %v459_v30 }
  0xd8   : > { %v3001_v29 = vunpack.i.l.bf16 %v3000_v26  ;;  %v561_v33 = vpop.permute.xlu0 %560  ;;  %v3002_v43 = vunpack.i.h.bf16 %v3000_v26 }
  0xd9   : > { %v570_v34 = vsel %vm568_vm1, %v559_v21, %v561_v33 }
  0xda   : > { %583 = vmatprep.subr.bf16.mxu1 %v570_v34  ;;  %v569_v35 = vsel %vm568_vm1, %v3001_v29, %v559_v21  ;;  %2697 = vmatmul.mubr.msk.bf16.vlgmr.msra.gmra.mrb[0].mxu0 %vm465_vm2, %v3065_v31  ;;  %v3074_v31 = vld [vmem:[%s4240_s1 + $0x58] sm:$0xff]  }
  0xdb   : > { %v664_v32 = vpop.permute.xlu1 %663  ;;  %584 = vmatpush1.bf16.msra.mxu1 %v569_v35  ;;  %514 = vmatprep.mubr.bf16.mxu0 %v3261_v0  ;;  %v3075_v35 = vld [vmem:[%s4240_s1 + $0x40] sm:$0xff]  }
  0xdc   : > { %v662_v37 = vpop.permute.xlu0 %661 }
  0xdd   : > { %v673_v38 = vsel %vm671_vm3, %v662_v37, %v664_v32 }
  0xde   : > { %686 = vmatprep.subr.bf16.mxu0 %v673_v38 }
  0xdf   : > { %v565_v36 = vpop.permute.xlu1 %564 }
  0xe0   : > { %v3005_v41 = vpop.permute.xlu0 %3004  ;;  %v571_v49 = vsel %vm568_vm1, %v3002_v43, %v565_v36 }
  0xe1   : > { %v3006_v42 = vunpack.i.l.bf16 %v3005_v41  ;;  %v3007_v48 = vunpack.i.h.bf16 %v3005_v41 }
  0xe2   : > { %2698 = vmatmul.mubr.msk.bf16.gmra.mrb[4].mxu0 %vm465_vm2, %v3066_v39  ;;  %v3076_v39 = vld [vmem:[%s4240_s1 + $0x60] sm:$0xff]  }
  0xe3   : > { %v668_v40 = vpop.permute.xlu1 %667  ;;  %v672_v45 = vsel %vm671_vm3, %v3006_v42, %v662_v37  ;;  %718 = vmatprep.mubr.bf16.mxu0 %v3261_v0 }
  0xe4   : > { %v567_v46 = vpop.permute.xlu0 %566  ;;  %687 = vmatpush1.bf16.msra.mxu0 %v672_v45  ;;  %v674_v55 = vsel %vm671_vm3, %v3007_v48, %v668_v40 }
  0xe5   : > { %v572_v47 = vsel %vm568_vm1, %v565_v36, %v567_v46 }
  0xe6   : > { %585 = vmatprep.subr.bf16.mxu1 %v572_v47 }
  0xe7   : > { %v773_v44 = vpop.permute.xlu1 %772  ;;  %586 = vmatpush1.bf16.msra.mxu1 %v571_v49  ;;  %v3078_v49 = vld [vmem:[%s4240_s1 + $0x68] sm:$0xff]  }
  0xe8   : > { %v670_v52 = vpop.permute.xlu0 %669 }
  0xe9   : > { %v675_v53 = vsel %vm671_vm3, %v668_v40, %v670_v52 }
  0xea   : > { %688 = vmatprep.subr.bf16.mxu0 %v675_v53  ;;  %2705 = vmatmul.mubr.msk.bf16.vlgmr.msra.gmra.mrb[0].mxu1 %vm465_vm2, %v3067_v50  ;;  %v3079_v53 = vld [vmem:[%s4240_s1 + $0x70] sm:$0xff]  }
  0xeb   : > { %v3010_v51 = vpop.permute.xlu1 %3009  ;;  %689 = vmatpush1.bf16.msra.mxu0 %v674_v55  ;;  %625 = vmatprep.mubr.bf16.mxu1 %v3261_v0 }
  0xec   : > { %v3011_v54 = vunpack.i.l.bf16 %v3010_v51  ;;  %v775_v58 = vpop.permute.xlu0 %774  ;;  %v3012_v13 = vunpack.i.h.bf16 %v3010_v51 }
  0xed   : > { %v784_v60 = vsel %vm782_vm4, %v773_v44, %v775_v58  ;;  %v3082_v58 = vld [vmem:[%s4240_s1 + $0x88] sm:$0xff]  }
  0xee   : > { %2713 = vmatmul.mubr.msk.bf16.vlgmr.msra.gmra.mrb[8].mxu0 %vm465_vm2, %v3068_v56  ;;  %797 = vmatprep.subr.bf16.mxu1 %v784_v60  ;;  %v783_v61 = vsel %vm782_vm4, %v3011_v54, %v773_v44  ;;  %v3077_v44 = vld [vmem:[%s4240_s1 + $0x48] sm:$0xff]   ;;  %v3080_v56 = vld [vmem:[%s4240_s1 + $0x80] sm:$0xff]  }
  0xef   : > { %v3015_v57 = vpop.permute.xlu1 %3014  ;;  %798 = vmatpush1.bf16.msra.mxu1 %v783_v61  ;;  %728 = vmatprep.mubr.bf16.mxu0 %v3261_v0 }
  0xf0   : > { %v3016_v59 = vunpack.i.l.bf16 %v3015_v57  ;;  %v978_v1 = vpop.permute.xlu0 %977  ;;  %v3017_v2 = vunpack.i.h.bf16 %v3015_v57  ;;  %v3081_v57 = vld [vmem:[%s4240_s1 + $0x78] sm:$0xff]  }
  0xf2   : > { %v989_v3 = vsel %vm987_vm5, %v978_v1, %v3016_v59  ;;  %2706 = vmatmul.mubr.msk.bf16.gmra.mrb[4].mxu1 %vm465_vm2, %v3069_v62  ;;  %v371_v62 = vlaneseq }
  0xf3   : > { %v779_v63 = vpop.permute.xlu1 %778  ;;  %1002 = vmatprep.subr.bf16.mxu0 %v989_v3  ;;  %829 = vmatprep.mubr.bf16.mxu1 %v3261_v0 }
  0xf4   : > { %v976_v7 = vpop.permute.xlu0 %975  ;;  %v785_v17 = vsel %vm782_vm4, %v3012_v13, %v779_v63 }
  0xf5   : > { %v988_v9 = vsel %vm987_vm5, %v976_v7, %v978_v1  ;;  %v372_v1 = vand.u32 127, %v371_v62 }
  0xf6   : > { %2714 = vmatmul.mubr.msk.bf16.gmra.mrb[12].mxu0 %vm465_vm2, %v3070_v5 }
  0xf7   : > { %v984_v6 = vpop.permute.xlu1 %983  ;;  %1003 = vmatpush1.bf16.msra.mxu0 %v988_v9  ;;  %1034 = vmatprep.mubr.bf16.mxu0 %v3261_v0  ;;  %v378_v9 = vand.u32 15, %v372_v1 }
  0xf8   : > { %v991_v10 = vsel %vm987_vm5, %v984_v6, %v3017_v2  ;;  %v781_v15 = vpop.permute.xlu0 %780 }
  0xf9   : > { %1004 = vmatprep.subr.bf16.mxu0 %v991_v10  ;;  %v786_v16 = vsel %vm782_vm4, %v779_v63, %v781_v15  ;;  %vm3722_vm9 = vcmp.ge.s32.totalorder %v378_v9, 1  ;;  %vm3726_vm10 = vcmp.lt.s32.totalorder %v378_v9, 15 }
  0xfa   : > { %799 = vmatprep.subr.bf16.mxu1 %v786_v16 }
  0xfb   : > { %v1089_v14 = vpop.permute.xlu1 %1088  ;;  %800 = vmatpush1.bf16.msra.mxu1 %v785_v17 }
  0xfc   : > { %v982_v20 = vpop.permute.xlu0 %981  ;;  %887 = vmatprep.subr.bf16.mxu1 %v3499_v11  ;;  %v3073_v11 = vld [vmem:[%s4240_s1 + $0x38] sm:$0xff]  }
  0xfd   : > { %v990_v21 = vsel %vm987_vm5, %v982_v20, %v984_v6  ;;  %v373_v6 = vadd.s32 128, %v372_v1 }
  0xfe   : > { %2721 = vmatmul.mubr.msk.bf16.vlgmr.msra.gmra.mrb[8].mxu1 %vm465_vm2, %v3071_v18  ;;  %1005 = vmatpush1.bf16.msra.mxu0 %v990_v21 }
  0xff   : > { %v1087_v19 = vpop.permute.xlu1 %1086  ;;  %839 = vmatprep.mubr.bf16.mxu1 %v3261_v0  ;;  %888 = vmatpush1.bf16.msra.mxu1 %v3491_v8  ;;  %v385_v10 = vand.u32 15, %v373_v6 }
 0x100   : > { %v3020_v24 = vpop.permute.xlu0 %3019  ;;  %889 = vmatprep.subr.bf16.mxu1 %v3505_v12  ;;  %v1099_v8 = vsel %vm1098_vm6, %v1087_v19, %v1089_v14 }
 0x101   : > { %v3021_v25 = vunpack.i.l.bf16 %v3020_v24  ;;  %2737 = vmatmul.mubr.msk.bf16.vlgmr.msra.gmra.mrb[16].mxu0 %vm465_vm2, %v3072_v22  ;;  %v3022_v26 = vunpack.i.h.bf16 %v3020_v24  ;;  %vm3730_vm11 = vcmp.ge.s32.totalorder %v385_v10, 1  ;;  %vm3734_vm12 = vcmp.lt.s32.totalorder %v385_v10, 15 }
 0x102   : > { %1044 = vmatprep.mubr.bf16.mxu0 %v3261_v0 }
 0x103   : > { %v1093_v23 = vpop.permute.xlu1 %1092  ;;  %v1100_v27 = vsel %vm1098_vm6, %v1089_v14, %v3021_v25  ;;  %890 = vmatpush1.bf16.msra.mxu1 %v3486_v4 }
 0x104   : > { %v1095_v29 = vpop.permute.xlu0 %1094  ;;  %1113 = vmatprep.subr.bf16.mxu0 %v1100_v27 }
 0x105   : > { %1114 = vmatpush1.bf16.msra.mxu0 %v1099_v8  ;;  %v1102_v30 = vsel %vm1098_vm6, %v1095_v29, %v3022_v26  ;;  %v1101_v33 = vsel %vm1098_vm6, %v1093_v23, %v1095_v29 }
 0x106   : > { %2722 = vmatmul.mubr.msk.bf16.gmra.mrb[12].mxu1 %vm465_vm2, %v3073_v11  ;;  %1115 = vmatprep.subr.bf16.mxu0 %v1102_v30 }
 0x107   : > { %v3025_v28 = vpop.permute.xlu1 %3024  ;;  %919 = vmatprep.mubr.bf16.mxu1 %v3261_v0 }
 0x108   : > { %v3026_v12 = vunpack.i.l.bf16 %v3025_v28  ;;  %v1200_v4 = vpop.permute.xlu0 %1199  ;;  %v3027_v45 = vunpack.i.h.bf16 %v3025_v28 }
 0x109   : > { %2738 = vmatmul.mubr.msk.bf16.gmra.mrb[20].mxu0 %vm465_vm2, %v3074_v31 }
 0x10a   : > { %v1211_v34 = vsel %vm1209_vm7, %v1200_v4, %v3026_v12  ;;  %1116 = vmatpush1.bf16.msra.mxu0 %v1101_v33  ;;  %1145 = vmatprep.mubr.bf16.mxu0 %v3261_v0 }
 0x10b   : > { %v1303_v32 = vpop.permute.xlu1 %1302  ;;  %1224 = vmatprep.subr.bf16.mxu1 %v1211_v34 }
 0x10c   : > { %v1198_v37 = vpop.permute.xlu0 %1197 }
 0x10d   : > { %v1210_v38 = vsel %vm1209_vm7, %v1198_v37, %v1200_v4 }
 0x10e   : > { %2729 = vmatmul.mubr.msk.bf16.vlgmr.msra.gmra.mrb[0].mxu1 %vm465_vm2, %v3075_v35 }
 0x10f   : > { %v1301_v36 = vpop.permute.xlu1 %1300  ;;  %1225 = vmatpush1.bf16.msra.mxu1 %v1210_v38  ;;  %929 = vmatprep.mubr.bf16.mxu1 %v3261_v0 }
 0x110   : > { %v1305_v40 = vpop.permute.xlu0 %1304  ;;  %v1313_v43 = vsel %vm1312_vm8, %v1301_v36, %v1303_v32 }
 0x111   : > { %2745 = vmatmul.mubr.msk.bf16.vlgmr.msra.gmra.mrb[24].mxu0 %vm465_vm2, %v3076_v39  ;;  %v1314_v42 = vsel %vm1312_vm8, %v1303_v32, %v1305_v40 }
 0x112   : > { %1327 = vmatprep.subr.bf16.mxu0 %v1314_v42  ;;  %1155 = vmatprep.mubr.bf16.mxu0 %v3261_v0 }
 0x113   : > { %v1204_v41 = vpop.permute.xlu1 %1203  ;;  %1328 = vmatpush1.bf16.msra.mxu0 %v1313_v43 }
 0x114   : > { %v1206_v46 = vpop.permute.xlu0 %1205 }
 0x115   : > { %v1212_v47 = vsel %vm1209_vm7, %v1204_v41, %v1206_v46  ;;  %v1213_v48 = vsel %vm1209_vm7, %v1206_v46, %v3027_v45 }
 0x116   : > { %2730 = vmatmul.mubr.msk.bf16.gmra.mrb[4].mxu1 %vm465_vm2, %v3077_v44  ;;  %1226 = vmatprep.subr.bf16.mxu1 %v1213_v48 }
 0x117   : > { %v1311_v50 = vpop.permute.xlu1 %1310  ;;  %1227 = vmatpush1.bf16.msra.mxu1 %v1212_v47  ;;  %1256 = vmatprep.mubr.bf16.mxu1 %v3261_v0 }
 0x118   : > { %v1309_v51 = vpop.permute.xlu0 %1308 }
 0x119   : > { %2746 = vmatmul.mubr.msk.bf16.gmra.mrb[28].mxu0 %vm465_vm2, %v3078_v49  ;;  %v1316_v52 = vsel %vm1312_vm8, %v1309_v51, %v1311_v50 }
 0x11a   : > { %1329 = vmatprep.subr.bf16.mxu0 %v1316_v52  ;;  %1359 = vmatprep.mubr.bf16.mxu0 %v3261_v0 }
 0x11c   : > { %v1307_v54 = vpop.permute.xlu0 %1306 }
 0x11d   : > { %v1315_v55 = vsel %vm1312_vm8, %v1307_v54, %v1309_v51 }
 0x11e   : > { %2753 = vmatmul.mubr.msk.bf16.vlgmr.msra.gmra.mrb[0].mxu1 %vm465_vm2, %v3079_v53  ;;  %1330 = vmatpush1.bf16.msra.mxu0 %v1315_v55 }
 0x11f   : > { %1266 = vmatprep.mubr.bf16.mxu1 %v3261_v0 }
 0x121   : > { %2761 = vmatmul.mubr.msk.bf16.vlgmr.msra.gmra.mrb[32].mxu0 %vm465_vm2, %v3080_v56 }
 0x122   : > { %1369 = vmatprep.mubr.bf16.mxu0 %v3261_v0 }
 0x126   : > { %2754 = vmatmul.mubr.msk.bf16.gmra.mrb[4].mxu1 %vm465_vm2, %v3081_v57 }
 0x127   : > { %1528 = vmatprep.mubr.bf16.mxu1 %v3261_v0 }
 0x129   : > { %2762 = vmatmul.mubr.msk.bf16.gmra.mrb[36].mxu0 %vm465_vm2, %v3082_v58 }
 0x12a   : > { %1638 = vmatprep.mubr.bf16.mxu0 %v3261_v0 }
 0x1ad   : > { %v506_v59 = vpop.f32.mrb[0].mxu0 }
 0x1ae   : > { %v508_v60 = vpop.f32.mrb[1].mxu0  ;;  %v525_v18 = vsel %vm3722_vm9, %v506_v59, 0.0 }
 0x1af   : > { %v510_v61 = vpop.f32.mrb[2].mxu0  ;;  %v526_v21 = vsel %vm3730_vm11, %v508_v60, 0.0 }
 0x1b0   : > { %v512_v63 = vpop.f32.mrb[3].mxu0  ;;  %v527_v25 = vsel %vm3722_vm9, %v510_v61, 0.0 }
 0x1b1   : > { %v528_v28 = vsel %vm3730_vm11, %v512_v63, 0.0 }
 0x1b5   : > { %v516_v2 = vpop.f32.mrb[4].mxu0 }
 0x1b6   : > { %v518_v3 = vpop.f32.mrb[5].mxu0  ;;  %v529_v31 = vsel %vm3722_vm9, %v516_v2, 0.0 }
 0x1b7   : > { %v520_v5 = vpop.f32.mrb[6].mxu0  ;;  %v530_v33 = vsel %vm3730_vm11, %v518_v3, 0.0 }
 0x1b8   : > { %v522_v7 = vpop.f32.mrb[7].mxu0  ;;  %v531_v37 = vsel %vm3722_vm9, %v520_v5, 0.0 }
 0x1b9   : > { %v532_v41 = vsel %vm3730_vm11, %v522_v7, 0.0 }
 0x1c1   : > { %v720_v17 = vpop.f32.mrb[8].mxu0 }
 0x1c2   : > { %v739_v19 = vsel %vm3726_vm10, %v720_v17, 0.0  ;;  %v722_v20 = vpop.f32.mrb[9].mxu0 }
 0x1c3   : > { %v2810_v22 = vadd.f32 %v739_v19, %v525_v18  ;;  %v740_v23 = vsel %vm3734_vm12, %v722_v20, 0.0  ;;  %v724_v24 = vpop.f32.mrb[10].mxu0 }
 0x1c4   : > { %v2815_v11 = vadd.f32 %v740_v23, %v526_v21  ;;  %v741_v26 = vsel %vm3726_vm10, %v724_v24, 0.0  ;;  %v726_v27 = vpop.f32.mrb[11].mxu0 }
 0x1c5   : > { %v2820_v8 = vadd.f32 %v741_v26, %v527_v25  ;;  %v742_v29 = vsel %vm3734_vm12, %v726_v27, 0.0 }
 0x1c6   : > { %v2825_v12 = vadd.f32 %v742_v29, %v528_v28 }
 0x1c9   : > { %v730_v30 = vpop.f32.mrb[12].mxu0 }
 0x1ca   : > { %v743_v32 = vsel %vm3726_vm10, %v730_v30, 0.0  ;;  %v732_v4 = vpop.f32.mrb[13].mxu0 }
 0x1cb   : > { %v2830_v34 = vadd.f32 %v743_v32, %v529_v31  ;;  %v744_v35 = vsel %vm3734_vm12, %v732_v4, 0.0  ;;  %v734_v36 = vpop.f32.mrb[14].mxu0 }
 0x1cc   : > { %v2835_v38 = vadd.f32 %v744_v35, %v530_v33  ;;  %v745_v39 = vsel %vm3726_vm10, %v734_v36, 0.0  ;;  %v736_v40 = vpop.f32.mrb[15].mxu0 }
 0x1cd   : > { %v2840_v42 = vadd.f32 %v745_v39, %v531_v37  ;;  %v746_v43 = vsel %vm3734_vm12, %v736_v40, 0.0 }
 0x1ce   : > { %v2845_v44 = vadd.f32 %v746_v43, %v532_v41 }
 0x1d1   : > { %v831_v45 = vpop.f32.mrb[8].mxu1 }
 0x1d2   : > { %v850_v46 = vsel %vm3722_vm9, %v831_v45, 0.0  ;;  %v833_v47 = vpop.f32.mrb[9].mxu1 }
 0x1d3   : > { %v2811_v48 = vadd.f32 %v2810_v22, %v850_v46  ;;  %v851_v49 = vsel %vm3730_vm11, %v833_v47, 0.0  ;;  %v835_v50 = vpop.f32.mrb[10].mxu1 }
 0x1d4   : > { %v2816_v51 = vadd.f32 %v2815_v11, %v851_v49  ;;  %v852_v52 = vsel %vm3722_vm9, %v835_v50, 0.0  ;;  %v837_v53 = vpop.f32.mrb[11].mxu1  ;;  %v1036_v54 = vpop.f32.mrb[16].mxu0 }
 0x1d5   : > { %v2821_v55 = vadd.f32 %v2820_v8, %v852_v52  ;;  %v853_v56 = vsel %vm3730_vm11, %v837_v53, 0.0  ;;  %v1055_v57 = vsel %vm3726_vm10, %v1036_v54, 0.0  ;;  %v1038_v58 = vpop.f32.mrb[17].mxu0 }
 0x1d6   : > { %v2826_v59 = vadd.f32 %v2825_v12, %v853_v56  ;;  %v2812_v60 = vadd.f32 %v2811_v48, %v1055_v57  ;;  %v1056_v61 = vsel %vm3734_vm12, %v1038_v58, 0.0  ;;  %v1040_v63 = vpop.f32.mrb[18].mxu0 }
 0x1d7   : > { %v2817_v1 = vadd.f32 %v2816_v51, %v1056_v61  ;;  %v1057_v2 = vsel %vm3726_vm10, %v1040_v63, 0.0  ;;  %v1042_v3 = vpop.f32.mrb[19].mxu0 }
 0x1d8   : > { %v2822_v5 = vadd.f32 %v2821_v55, %v1057_v2  ;;  %v1058_v6 = vsel %vm3734_vm12, %v1042_v3, 0.0 }
 0x1d9   : > { %v2827_v7 = vadd.f32 %v2826_v59, %v1058_v6  ;;  %v841_v9 = vpop.f32.mrb[12].mxu1  ;;  %v1403_v6 = vpop.permute.xlu1 %1402 }
 0x1da   : > { %v854_v10 = vsel %vm3722_vm9, %v841_v9, 0.0  ;;  %v843_v17 = vpop.f32.mrb[13].mxu1 }
 0x1db   : > { %v2831_v18 = vadd.f32 %v2830_v34, %v854_v10  ;;  %v855_v19 = vsel %vm3730_vm11, %v843_v17, 0.0  ;;  %v845_v20 = vpop.f32.mrb[14].mxu1 }
 0x1dc   : > { %v2836_v21 = vadd.f32 %v2835_v38, %v855_v19  ;;  %v856_v22 = vsel %vm3722_vm9, %v845_v20, 0.0  ;;  %v847_v23 = vpop.f32.mrb[15].mxu1  ;;  %v1046_v24 = vpop.f32.mrb[20].mxu0 }
 0x1dd   : > { %v2841_v25 = vadd.f32 %v2840_v42, %v856_v22  ;;  %v857_v11 = vsel %vm3730_vm11, %v847_v23, 0.0  ;;  %v1059_v26 = vsel %vm3726_vm10, %v1046_v24, 0.0  ;;  %v1048_v27 = vpop.f32.mrb[21].mxu0  ;;  %v1408_v23 = vpop.permute.xlu0 %1407 }
 0x1de   : > { %v2846_v28 = vadd.f32 %v2845_v44, %v857_v11  ;;  %v2832_v8 = vadd.f32 %v2831_v18, %v1059_v26  ;;  %v1060_v29 = vsel %vm3734_vm12, %v1048_v27, 0.0  ;;  %v1050_v12 = vpop.f32.mrb[22].mxu0 }
 0x1df   : > { %v2837_v30 = vadd.f32 %v2836_v21, %v1060_v29  ;;  %v1061_v31 = vsel %vm3726_vm10, %v1050_v12, 0.0  ;;  %v1052_v32 = vpop.f32.mrb[23].mxu0 }
 0x1e0   : > { %v2842_v4 = vadd.f32 %v2841_v25, %v1061_v31  ;;  %v1062_v33 = vsel %vm3734_vm12, %v1052_v32, 0.0 }
 0x1e1   : > { %v2847_v34 = vadd.f32 %v2846_v28, %v1062_v33 }
 0x1e4   : > { %v1147_v35 = vpop.f32.mrb[24].mxu0 }
 0x1e5   : > { %v1166_v36 = vsel %vm3722_vm9, %v1147_v35, 0.0  ;;  %v1149_v37 = vpop.f32.mrb[25].mxu0 }
 0x1e6   : > { %v2813_v38 = vadd.f32 %v2812_v60, %v1166_v36  ;;  %v1167_v39 = vsel %vm3730_vm11, %v1149_v37, 0.0  ;;  %v1151_v40 = vpop.f32.mrb[26].mxu0 }
 0x1e7   : > { %v2818_v41 = vadd.f32 %v2817_v1, %v1167_v39  ;;  %v1168_v42 = vsel %vm3722_vm9, %v1151_v40, 0.0  ;;  %v1153_v43 = vpop.f32.mrb[27].mxu0 }
 0x1e8   : > { %v2823_v44 = vadd.f32 %v2822_v5, %v1168_v42  ;;  %v1169_v45 = vsel %vm3730_vm11, %v1153_v43, 0.0 }
 0x1e9   : > { %v2828_v46 = vadd.f32 %v2827_v7, %v1169_v45 }
 0x1ec   : > { %v1157_v47 = vpop.f32.mrb[28].mxu0 }
 0x1ed   : > { %v1170_v48 = vsel %vm3722_vm9, %v1157_v47, 0.0  ;;  %v1159_v49 = vpop.f32.mrb[29].mxu0 }
 0x1ee   : > { %v2833_v50 = vadd.f32 %v2832_v8, %v1170_v48  ;;  %v1171_v51 = vsel %vm3730_vm11, %v1159_v49, 0.0  ;;  %v1161_v52 = vpop.f32.mrb[30].mxu0 }
 0x1ef   : > { %v2838_v53 = vadd.f32 %v2837_v30, %v1171_v51  ;;  %v1172_v54 = vsel %vm3722_vm9, %v1161_v52, 0.0  ;;  %v1163_v55 = vpop.f32.mrb[31].mxu0  ;;  %v1413_v30 = vpop.permute.xlu1 %1412 }
 0x1f0   : > { %v2843_v56 = vadd.f32 %v2842_v4, %v1172_v54  ;;  %v1173_v57 = vsel %vm3730_vm11, %v1163_v55, 0.0 }
 0x1f1   : > { %v2848_v58 = vadd.f32 %v2847_v34, %v1173_v57  ;;  %v1258_v59 = vpop.f32.mrb[0].mxu1 }
 0x1f2   : > { %v2814_v60 = vadd.f32 %v2813_v38, %v1258_v59  ;;  %v1260_v61 = vpop.f32.mrb[1].mxu1 }
 0x1f3   : > { %v2819_v63 = vadd.f32 %v2818_v41, %v1260_v61  ;;  %v1262_v1 = vpop.f32.mrb[2].mxu1  ;;  %v1418_v54 = vpop.permute.xlu1 %1417 }
 0x1f4   : > { %v2824_v2 = vadd.f32 %v2823_v44, %v1262_v1  ;;  %v1264_v3 = vpop.f32.mrb[3].mxu1  ;;  %v1361_v5 = vpop.f32.mrb[32].mxu0 }
 0x1f5   : > { %v2829_v7 = vadd.f32 %v2828_v46, %v1264_v3  ;;  %v1380_v9 = vsel %vm3726_vm10, %v1361_v5, 0.0  ;;  %v1363_v10 = vpop.f32.mrb[33].mxu0  ;;  %v2413_v3 = vld [vmem:[%s4243_s4] sm:$0xff]  ;;  %v2415_v5 = vld [vmem:[%s4243_s4 + $0x10] sm:$0xff] }
 0x1f6   : > { %v1388_v17 = vadd.f32 %v2814_v60, %v1380_v9  ;;  %v1381_v18 = vsel %vm3734_vm12, %v1363_v10, 0.0  ;;  %v1365_v19 = vpop.f32.mrb[34].mxu0  ;;  %v3032_v10 = vpop.permute.xlu0 %3031 }
 0x1f7   : > { %v1389_v20 = vadd.f32 %v2819_v63, %v1381_v18  ;;  %v1382_v21 = vsel %vm3726_vm10, %v1365_v19, 0.0  ;;  %v1367_v22 = vpop.f32.mrb[35].mxu0  ;;  %v3037_v9 = vpop.permute.xlu1 %3036 }
 0x1f8   : > { %v1420_v24 = vadd.f32 %v1403_v6, %v1388_v17  ;;  %v1390_v25 = vadd.f32 %v2824_v2, %v1382_v21  ;;  %v1383_v11 = vsel %vm3734_vm12, %v1367_v22, 0.0  ;;  %v3038_v19 = vunpack.i.l.bf16 %v3037_v9 }
 0x1f9   : > { %v1421_v26 = vadd.f32 %v1403_v6, %v1389_v20  ;;  %v1391_v27 = vadd.f32 %v2829_v7, %v1383_v11  ;;  %v1268_v28 = vpop.f32.mrb[4].mxu1  ;;  %v2414_v6 = vld [vmem:[%s4243_s4 + $0x8] sm:$0xff]  ;;  %v2416_v7 = vld [vmem:[%s4243_s4 + $0x18] sm:$0xff]  ;;  %v3033_v20 = vunpack.i.l.bf16 %v3032_v10 }
 0x1fa   : > { %v2834_v8 = vadd.f32 %v2833_v50, %v1268_v28  ;;  %v1422_v29 = vadd.f32 %v1408_v23, %v1390_v25  ;;  %v1270_v12 = vpop.f32.mrb[5].mxu1  ;;  %v1428_v33 = vmax.f32 %v1420_v24, 0.0 }
 0x1fb   : > { %v1423_v31 = vadd.f32 %v1408_v23, %v1391_v27  ;;  %v2839_v32 = vadd.f32 %v2838_v53, %v1270_v12  ;;  %v1272_v4 = vpop.f32.mrb[6].mxu1  ;;  %v1429_v38 = vmax.f32 %v1421_v26, 0.0  ;;  %v3034_v27 = vunpack.i.h.bf16 %v3032_v10  ;;  %v3083_v12 = vld [vmem:[#allocation6] sm:$0xff]  }
 0x1fc   : > { %v1430_v34 = vmax.f32 %v1422_v29, 0.0  ;;  %v2844_v35 = vadd.f32 %v2843_v56, %v1272_v4  ;;  %v1274_v36 = vpop.f32.mrb[7].mxu1  ;;  %v1371_v37 = vpop.f32.mrb[36].mxu0 }
 0x1fd   : > { %v1431_v39 = vmax.f32 %v1423_v31, 0.0  ;;  %v2849_v40 = vadd.f32 %v2848_v58, %v1274_v36  ;;  %v1384_v41 = vsel %vm3726_vm10, %v1371_v37, 0.0  ;;  %v1373_v42 = vpop.f32.mrb[37].mxu0 }
 0x1fe   : > { %v3828_v43 = vpack.c.bf16 %v1430_v34, %v1428_v33  ;;  %v1392_v44 = vadd.f32 %v2834_v8, %v1384_v41  ;;  %v1385_v45 = vsel %vm3734_vm12, %v1373_v42, 0.0  ;;  %v1375_v46 = vpop.f32.mrb[38].mxu0 }
 0x1ff   : > { %v3832_v47 = vpack.c.bf16 %v1431_v39, %v1429_v38  ;;  %v1393_v48 = vadd.f32 %v2839_v32, %v1385_v45  ;;  %v1386_v49 = vsel %vm3726_vm10, %v1375_v46, 0.0  ;;  %v1377_v50 = vpop.f32.mrb[39].mxu0  ;;  %v3039_v38 = vunpack.i.h.bf16 %v3037_v9 }
 0x200   : > { %v1424_v51 = vadd.f32 %v1413_v30, %v1392_v44  ;;  %v1394_v52 = vadd.f32 %v2844_v35, %v1386_v49  ;;  %v1387_v53 = vsel %vm3734_vm12, %v1377_v50, 0.0  ;;  %1582 = vrot.lane.b32.xlu1 %v3828_v43, %s3263_s17  ;;  %1472 = vrot.lane.b32.xlu0 %v3828_v43, %s3262_s15  ;;  %v3084_v35 = vld [vmem:[#allocation6 + $0x8] sm:$0xff]   ;;  %v3085_v44 = vld [vmem:[#allocation6 + $0x10] sm:$0xff]   ;;  %v3086_v50 = vld [vmem:[#allocation6 + $0x20] sm:$0xff]  }
 0x201   : > { %v1425_v55 = vadd.f32 %v1413_v30, %v1393_v48  ;;  %v1395_v56 = vadd.f32 %v2849_v40, %v1387_v53 }
 0x202   : > { %v1426_v57 = vadd.f32 %v1418_v54, %v1394_v52  ;;  %v1432_v59 = vmax.f32 %v1424_v51, 0.0 }
 0x203   : > { %v1427_v58 = vadd.f32 %v1418_v54, %v1395_v56  ;;  %v1433_v61 = vmax.f32 %v1425_v55, 0.0  ;;  %v3087_v56 = vld [vmem:[#allocation6 + $0x18] sm:$0xff]  }
 0x204   : > { %v1434_v60 = vmax.f32 %v1426_v57, 0.0  ;;  %1584 = vrot.lane.b32.xlu0 %v3832_v47, %s3263_s17  ;;  %1474 = vrot.lane.b32.xlu1 %v3832_v47, %s3262_s15 }
 0x205   : > { %v1435_v63 = vmax.f32 %v1427_v58, 0.0 }
 0x206   : > { %v3846_v1 = vpack.c.bf16 %v1434_v60, %v1432_v59 }
 0x207   : > { %v3848_v2 = vpack.c.bf16 %v1435_v63, %v1433_v61  ;;  %v3088_v61 = vld [vmem:[#allocation6 + $0x28] sm:$0xff]  }
 0x208   : > { %1478 = vrot.lane.b32.xlu1 %v3846_v1, %s3262_s15 }
 0x209   : > { %1480 = vrot.lane.b32.xlu0 %v3848_v2, %s3262_s15  ;;  %s4286_s15 = smov 127  }
 0x20c   : > { %1686 = vrot.lane.b32.xlu1 %v3832_v47, %s3264_s26 }
 0x20d   : > { %1684 = vrot.lane.b32.xlu0 %v3828_v43, %s3264_s26 }
 0x210   : > { %1588 = vrot.lane.b32.xlu1 %v3846_v1, %s3263_s17 }
 0x211   : > { %3041 = vrot.lane.b32.xlu0 %v3261_v0, %s3264_s26 }
 0x214   : > { %1690 = vrot.lane.b32.xlu1 %v3846_v1, %s3264_s26 }
 0x215   : > { %1590 = vrot.lane.b32.xlu0 %v3848_v2, %s3263_s17 }
 0x218   : > { %1794 = vrot.lane.b32.xlu1 %v3828_v43, %s4285_s16 }
 0x219   : > { %1692 = vrot.lane.b32.xlu0 %v3848_v2, %s3264_s26  ;;  %s4287_s26 = smov 113  }
 0x21c   : > { %3046 = vrot.lane.b32.xlu1 %v3261_v0, %s4285_s16 }
 0x21d   : > { %1796 = vrot.lane.b32.xlu0 %v3832_v47, %s4285_s16 }
 0x220   : > { %3051 = vrot.lane.b32.xlu1 %v3261_v0, %s4286_s15 }
 0x221   : > { %1998 = vrot.lane.b32.xlu0 %v3832_v47, %s4286_s15 }
 0x224   : > { %1800 = vrot.lane.b32.xlu1 %v3846_v1, %s4285_s16 }
 0x225   : > { %1996 = vrot.lane.b32.xlu0 %v3828_v43, %s4286_s15 }
 0x228   : > { %2004 = vrot.lane.b32.xlu1 %v3848_v2, %s4286_s15 }
 0x229   : > { %1802 = vrot.lane.b32.xlu0 %v3848_v2, %s4285_s16  ;;  %s4188_s16 = scalar_lea.hbm %s4248_s9, %s2809_s14 }
 0x22c   : > { %2108 = vrot.lane.b32.xlu1 %v3832_v47, %s4287_s26 }
 0x22d   : > { %2002 = vrot.lane.b32.xlu0 %v3846_v1, %s4286_s15  ;;  %s2588_s15 = scalar_lea.sflag [#allocation5], %s3461_s18 }
 0x230   : > { %2106 = vrot.lane.b32.xlu1 %v3828_v43, %s4287_s26 }
 0x231   : > { %3056 = vrot.lane.b32.xlu0 %v3261_v0, %s4287_s26 }
 0x234   : > { %2112 = vrot.lane.b32.xlu1 %v3846_v1, %s4287_s26 }
 0x235   : > { %2218 = vrot.lane.b32.xlu0 %v3832_v47, %s4288_s25 }
 0x238   : > { %3061 = vrot.lane.b32.xlu1 %v3261_v0, %s4288_s25 }
 0x239   : > { %2114 = vrot.lane.b32.xlu0 %v3848_v2, %s4287_s26  ;;  %s3270_s26 = smov [#allocation8]  }
 0x23c   : > { %2320 = vrot.lane.b32.xlu1 %v3832_v47, %s3269_s21 }
 0x23d   : > { %2216 = vrot.lane.b32.xlu0 %v3828_v43, %s4288_s25 }
 0x240   : > { %2318 = vrot.lane.b32.xlu1 %v3828_v43, %s3269_s21 }
 0x241   : > { %2322 = vrot.lane.b32.xlu0 %v3261_v0, %s3269_s21 }
 0x244   : > { %2222 = vrot.lane.b32.xlu1 %v3846_v1, %s4288_s25 }
 0x245   : > { %2224 = vrot.lane.b32.xlu0 %v3848_v2, %s4288_s25  ;;  %s3187_s25 = sshll.u32 %s3270_s26, 4  ;;  %s3188_s25 = int_to_ptr.vmem [resolvable:$false] %s3187_s25 }
 0x246   : > { %p3190_p10 = scmp.lt.s32.totalorder %s4194_s23, %s3188_s25 }
 0x248   : > { %2328 = vrot.lane.b32.xlu1 %v3261_v0, %s3269_s21 }
 0x249   : > { %2326 = vrot.lane.b32.xlu0 %v3848_v2, %s3269_s21 }
 0x24c   : > { %2419 = vperm.xlu1 %3028, %v2413_v3  }
 0x24d   : > { %2324 = vrot.lane.b32.xlu0 %v3846_v1, %s3269_s21  ;;  %s3183_s21 = scalar_lea.vmem %s4194_s23, 1024 }
 0x24e   : > { %p3184_p4 = scmp.ne.s32.totalorder %s4194_s23, %s3183_s21 }
 0x250   : > { %2429 = vperm.xlu1 %3028, %v2415_v5   ;;  %p3185_p6 = pnand %p3184_p4, %p3413_p12 }
 0x251   : > { %2424 = vperm.xlu0 %3029, %v2414_v6  }
 0x252   : > { %p3186_p8 = pneg %p3185_p6 }
 0x255   : > { %2434 = vperm.xlu0 %3029, %v2416_v7  }
 0x272   : > { %v1583_v17 = vpop.permute.xlu1 %1582  ;;  %v1473_v18 = vpop.permute.xlu0 %1472 }
 0x273   : > { %v1592_v25 = vsel %vm568_vm1, %v3038_v19, %v1583_v17  ;;  %v1482_v11 = vsel %vm456_vm0, %v3033_v20, %v1473_v18  ;;  %v3089_v20 = vld [vmem:[#allocation6 + $0x30] sm:$0xff]  }
 0x276   : > { %v1585_v21 = vpop.permute.xlu0 %1584  ;;  %v1475_v22 = vpop.permute.xlu1 %1474 }
 0x277   : > { %v1483_v23 = vsel %vm456_vm0, %v1473_v18, %v1475_v22  ;;  %v1593_v24 = vsel %vm568_vm1, %v1583_v17, %v1585_v21 }
 0x278   : > { %1496 = vmatprep.subr.bf16.mxu1 %v1483_v23  ;;  %1606 = vmatprep.subr.bf16.mxu0 %v1593_v24  ;;  %v3090_v24 = vld [vmem:[#allocation6 + $0x50] sm:$0xff]  }
 0x279   : > { %1497 = vmatpush1.bf16.msra.mxu1 %v1482_v11  ;;  %1607 = vmatpush1.bf16.msra.mxu0 %v1592_v25 }
 0x27a   : > { %v1479_v26 = vpop.permute.xlu1 %1478 }
 0x27b   : > { %v1481_v28 = vpop.permute.xlu0 %1480  ;;  %v1484_v29 = vsel %vm456_vm0, %v3034_v27, %v1479_v26  ;;  %v3091_v27 = vld [vmem:[#allocation6 + $0x38] sm:$0xff]  }
 0x27c   : > { %v1485_v8 = vsel %vm456_vm0, %v1479_v26, %v1481_v28 }
 0x27d   : > { %1498 = vmatprep.subr.bf16.mxu1 %v1485_v8 }
 0x27e   : > { %v1687_v30 = vpop.permute.xlu1 %1686  ;;  %1499 = vmatpush1.bf16.msra.mxu1 %v1484_v29 }
 0x27f   : > { %v1685_v31 = vpop.permute.xlu0 %1684 }
 0x280   : > { %v1695_v32 = vsel %vm671_vm3, %v1685_v31, %v1687_v30 }
 0x281   : > { %2765 = vmatmul.mubr.msk.bf16.vlgmr.msra.gmra.mrb[16].mxu1 %vm465_vm2, %v3083_v12  ;;  %1708 = vmatprep.subr.bf16.mxu1 %v1695_v32 }
 0x282   : > { %v1589_v4 = vpop.permute.xlu1 %1588  ;;  %1538 = vmatprep.mubr.bf16.mxu1 %v3261_v0 }
 0x283   : > { %v3042_v33 = vpop.permute.xlu0 %3041  ;;  %v1594_v41 = vsel %vm568_vm1, %v3039_v38, %v1589_v4 }
 0x284   : > { %v3043_v34 = vunpack.i.l.bf16 %v3042_v33  ;;  %v3044_v42 = vunpack.i.h.bf16 %v3042_v33  ;;  %v3093_v33 = vld [vmem:[#allocation6 + $0x40] sm:$0xff]  }
 0x286   : > { %v1691_v36 = vpop.permute.xlu1 %1690  ;;  %v1694_v37 = vsel %vm671_vm3, %v3043_v34, %v1685_v31 }
 0x287   : > { %v1591_v39 = vpop.permute.xlu0 %1590  ;;  %1709 = vmatpush1.bf16.msra.mxu1 %v1694_v37  ;;  %v1696_v49 = vsel %vm671_vm3, %v3044_v42, %v1691_v36  ;;  %v3094_v37 = vld [vmem:[#allocation6 + $0x60] sm:$0xff]   ;;  %v3095_v42 = vld [vmem:[#allocation6 + $0x48] sm:$0xff]  }
 0x288   : > { %v1595_v40 = vsel %vm568_vm1, %v1589_v4, %v1591_v39 }
 0x289   : > { %2766 = vmatmul.mubr.msk.bf16.gmra.mrb[20].mxu1 %vm465_vm2, %v3084_v35  ;;  %1608 = vmatprep.subr.bf16.mxu0 %v1595_v40 }
 0x28a   : > { %v1795_v45 = vpop.permute.xlu1 %1794  ;;  %1609 = vmatpush1.bf16.msra.mxu0 %v1594_v41  ;;  %1740 = vmatprep.mubr.bf16.mxu1 %v3261_v0 }
 0x28b   : > { %v1693_v46 = vpop.permute.xlu0 %1692 }
 0x28c   : > { %v1697_v48 = vsel %vm671_vm3, %v1691_v36, %v1693_v46 }
 0x28d   : > { %1710 = vmatprep.subr.bf16.mxu1 %v1697_v48  ;;  %2769 = vmatmul.mubr.msk.bf16.vlgmr.msra.gmra.mrb[40].mxu0 %vm465_vm2, %v3085_v44 }
 0x28e   : > { %v3047_v51 = vpop.permute.xlu1 %3046  ;;  %1711 = vmatpush1.bf16.msra.mxu1 %v1696_v49  ;;  %1648 = vmatprep.mubr.bf16.mxu0 %v3261_v0 }
 0x28f   : > { %v3048_v52 = vunpack.i.l.bf16 %v3047_v51  ;;  %v1797_v53 = vpop.permute.xlu0 %1796  ;;  %v3049_v9 = vunpack.i.h.bf16 %v3047_v51 }
 0x290   : > { %v1805_v54 = vsel %vm782_vm4, %v1795_v45, %v1797_v53 }
 0x291   : > { %2773 = vmatmul.mubr.msk.bf16.vlgmr.msra.gmra.mrb[24].mxu1 %vm465_vm2, %v3086_v50  ;;  %1818 = vmatprep.subr.bf16.mxu0 %v1805_v54  ;;  %v1804_v55 = vsel %vm782_vm4, %v3048_v52, %v1795_v45  ;;  %v3096_v50 = vld [vmem:[#allocation6 + $0x68] sm:$0xff]   ;;  %v3097_v54 = vld [vmem:[#allocation6 + $0x70] sm:$0xff]  }
 0x292   : > { %v3052_v57 = vpop.permute.xlu1 %3051  ;;  %1819 = vmatpush1.bf16.msra.mxu0 %v1804_v55  ;;  %1750 = vmatprep.mubr.bf16.mxu1 %v3261_v0 }
 0x293   : > { %v3053_v58 = vunpack.i.l.bf16 %v3052_v57  ;;  %v1999_v59 = vpop.permute.xlu0 %1998  ;;  %v3054_v6 = vunpack.i.h.bf16 %v3052_v57  ;;  %v3098_v57 = vld [vmem:[#allocation6 + $0x80] sm:$0xff]  }
 0x295   : > { %v2009_v60 = vsel %vm987_vm5, %v1999_v59, %v3053_v58  ;;  %2770 = vmatmul.mubr.msk.bf16.gmra.mrb[44].mxu0 %vm465_vm2, %v3087_v56  ;;  %v3099_v58 = vld [vmem:[#allocation6 + $0x78] sm:$0xff]  }
 0x296   : > { %v1801_v63 = vpop.permute.xlu1 %1800  ;;  %2022 = vmatprep.subr.bf16.mxu1 %v2009_v60  ;;  %1850 = vmatprep.mubr.bf16.mxu0 %v3261_v0 }
 0x297   : > { %v1997_v3 = vpop.permute.xlu0 %1996  ;;  %v1806_v19 = vsel %vm782_vm4, %v3049_v9, %v1801_v63 }
 0x298   : > { %v2008_v5 = vsel %vm987_vm5, %v1997_v3, %v1999_v59  ;;  %v3100_v59 = vld [vmem:[#allocation6 + $0x88] sm:$0xff]  }
 0x299   : > { %2774 = vmatmul.mubr.msk.bf16.gmra.mrb[28].mxu1 %vm465_vm2, %v3088_v61 }
 0x29a   : > { %2023 = vmatpush1.bf16.msra.mxu1 %v2008_v5  ;;  %v2005_v7 = vpop.permute.xlu1 %2004  ;;  %2054 = vmatprep.mubr.bf16.mxu1 %v3261_v0 }
 0x29b   : > { %v1803_v10 = vpop.permute.xlu0 %1802  ;;  %v2011_v17 = vsel %vm987_vm5, %v2005_v7, %v3054_v6 }
 0x29c   : > { %2024 = vmatprep.subr.bf16.mxu1 %v2011_v17  ;;  %v1807_v18 = vsel %vm782_vm4, %v1801_v63, %v1803_v10 }
 0x29d   : > { %1820 = vmatprep.subr.bf16.mxu0 %v1807_v18 }
 0x29e   : > { %v2109_v21 = vpop.permute.xlu1 %2108  ;;  %1821 = vmatpush1.bf16.msra.mxu0 %v1806_v19 }
 0x29f   : > { %1908 = vmatprep.subr.bf16.mxu0 %v3832_v47  ;;  %v2003_v22 = vpop.permute.xlu0 %2002 }
 0x2a0   : > { %v2010_v23 = vsel %vm987_vm5, %v2003_v22, %v2005_v7 }
 0x2a1   : > { %2777 = vmatmul.mubr.msk.bf16.vlgmr.msra.gmra.mrb[48].mxu0 %vm465_vm2, %v3089_v20  ;;  %2025 = vmatpush1.bf16.msra.mxu1 %v2010_v23 }
 0x2a2   : > { %v2107_v25 = vpop.permute.xlu1 %2106  ;;  %1909 = vmatpush1.bf16.msra.mxu0 %v3828_v43  ;;  %1860 = vmatprep.mubr.bf16.mxu0 %v3261_v0  ;;  %v3092_v43 = vld [vmem:[#allocation6 + $0x58] sm:$0xff]  }
 0x2a3   : > { %1910 = vmatprep.subr.bf16.mxu0 %v3848_v2  ;;  %v3057_v11 = vpop.permute.xlu0 %3056  ;;  %v2118_v8 = vsel %vm1098_vm6, %v2107_v25, %v2109_v21 }
 0x2a4   : > { %v3058_v26 = vunpack.i.l.bf16 %v3057_v11  ;;  %2785 = vmatmul.mubr.msk.bf16.vlgmr.msra.gmra.mrb[32].mxu1 %vm465_vm2, %v3090_v24  ;;  %v3059_v2 = vunpack.i.h.bf16 %v3057_v11 }
 0x2a5   : > { %2064 = vmatprep.mubr.bf16.mxu1 %v3261_v0 }
 0x2a6   : > { %v2113_v47 = vpop.permute.xlu1 %2112  ;;  %1911 = vmatpush1.bf16.msra.mxu0 %v3846_v1  ;;  %v2119_v28 = vsel %vm1098_vm6, %v2109_v21, %v3058_v26 }
 0x2a7   : > { %v2219_v29 = vpop.permute.xlu0 %2218  ;;  %2132 = vmatprep.subr.bf16.mxu1 %v2119_v28 }
 0x2a8   : > { %2133 = vmatpush1.bf16.msra.mxu1 %v2118_v8 }
 0x2a9   : > { %2778 = vmatmul.mubr.msk.bf16.gmra.mrb[52].mxu0 %vm465_vm2, %v3091_v27 }
 0x2aa   : > { %v3062_v12 = vpop.permute.xlu1 %3061  ;;  %1940 = vmatprep.mubr.bf16.mxu0 %v3261_v0 }
 0x2ab   : > { %v3063_v30 = vunpack.i.l.bf16 %v3062_v12  ;;  %v2115_v31 = vpop.permute.xlu0 %2114  ;;  %v3064_v44 = vunpack.i.h.bf16 %v3062_v12 }
 0x2ac   : > { %v2120_v32 = vsel %vm1098_vm6, %v2113_v47, %v2115_v31  ;;  %2786 = vmatmul.mubr.msk.bf16.gmra.mrb[36].mxu1 %vm465_vm2, %v3092_v43  ;;  %v2121_v1 = vsel %vm1098_vm6, %v2115_v31, %v3059_v2 }
 0x2ad   : > { %2134 = vmatprep.subr.bf16.mxu1 %v2121_v1  ;;  %v2229_v4 = vsel %vm1209_vm7, %v2219_v29, %v3063_v30  ;;  %2164 = vmatprep.mubr.bf16.mxu1 %v3261_v0 }
 0x2ae   : > { %v2321_v34 = vpop.permute.xlu1 %2320  ;;  %2135 = vmatpush1.bf16.msra.mxu1 %v2120_v32  ;;  %2242 = vmatprep.subr.bf16.mxu0 %v2229_v4 }
 0x2af   : > { %v2217_v35 = vpop.permute.xlu0 %2216 }
 0x2b0   : > { %v2228_v36 = vsel %vm1209_vm7, %v2217_v35, %v2219_v29 }
 0x2b1   : > { %2781 = vmatmul.mubr.msk.bf16.vlgmr.msra.gmra.mrb[40].mxu0 %vm465_vm2, %v3093_v33 }
 0x2b2   : > { %2243 = vmatpush1.bf16.msra.mxu0 %v2228_v36  ;;  %v2319_v38 = vpop.permute.xlu1 %2318  ;;  %1950 = vmatprep.mubr.bf16.mxu0 %v3261_v0 }
 0x2b3   : > { %v2323_v39 = vpop.permute.xlu0 %2322  ;;  %v2330_v41 = vsel %vm1312_vm8, %v2319_v38, %v2321_v34 }
 0x2b4   : > { %2789 = vmatmul.mubr.msk.bf16.vlgmr.msra.gmra.mrb[40].mxu1 %vm465_vm2, %v3094_v37  ;;  %v2331_v40 = vsel %vm1312_vm8, %v2321_v34, %v2323_v39 }
 0x2b5   : > { %2344 = vmatprep.subr.bf16.mxu1 %v2331_v40  ;;  %2174 = vmatprep.mubr.bf16.mxu1 %v3261_v0 }
 0x2b6   : > { %v2223_v45 = vpop.permute.xlu1 %2222  ;;  %2345 = vmatpush1.bf16.msra.mxu1 %v2330_v41 }
 0x2b7   : > { %v2225_v46 = vpop.permute.xlu0 %2224 }
 0x2b8   : > { %v2230_v48 = vsel %vm1209_vm7, %v2223_v45, %v2225_v46  ;;  %v2231_v49 = vsel %vm1209_vm7, %v2225_v46, %v3064_v44 }
 0x2b9   : > { %2782 = vmatmul.mubr.msk.bf16.gmra.mrb[44].mxu0 %vm465_vm2, %v3095_v42  ;;  %2244 = vmatprep.subr.bf16.mxu0 %v2231_v49 }
 0x2ba   : > { %2245 = vmatpush1.bf16.msra.mxu0 %v2230_v48  ;;  %v2329_v51 = vpop.permute.xlu1 %2328  ;;  %2274 = vmatprep.mubr.bf16.mxu0 %v3261_v0 }
 0x2bb   : > { %v2327_v52 = vpop.permute.xlu0 %2326 }
 0x2bc   : > { %2790 = vmatmul.mubr.msk.bf16.gmra.mrb[44].mxu1 %vm465_vm2, %v3096_v50  ;;  %v2333_v53 = vsel %vm1312_vm8, %v2327_v52, %v2329_v51 }
 0x2bd   : > { %2346 = vmatprep.subr.bf16.mxu1 %v2333_v53  ;;  %2376 = vmatprep.mubr.bf16.mxu1 %v3261_v0 }
 0x2bf   : > { %v2325_v55 = vpop.permute.xlu0 %2324 }
 0x2c0   : > { %v2332_v56 = vsel %vm1312_vm8, %v2325_v55, %v2327_v52 }
 0x2c1   : > { %2793 = vmatmul.mubr.msk.bf16.vlgmr.msra.gmra.mrb[40].mxu0 %vm465_vm2, %v3097_v54  ;;  %2347 = vmatpush1.bf16.msra.mxu1 %v2332_v56 }
 0x2c2   : > { %2284 = vmatprep.mubr.bf16.mxu0 %v3261_v0 }
 0x2c4   : > { %2797 = vmatmul.mubr.msk.bf16.vlgmr.msra.gmra.mrb[48].mxu1 %vm465_vm2, %v3098_v57 }
 0x2c5   : > { %2386 = vmatprep.mubr.bf16.mxu1 %v3261_v0 }
 0x2c9   : > { %2794 = vmatmul.mubr.msk.bf16.gmra.mrb[44].mxu0 %vm465_vm2, %v3099_v58 }
 0x2cc   : > { %2798 = vmatmul.mubr.msk.bf16.gmra.mrb[52].mxu1 %vm465_vm2, %v3100_v59 }
 0x354   : > { %v1530_v60 = vpop.f32.mrb[16].mxu1 }
 0x355   : > { %v1532_v61 = vpop.f32.mrb[17].mxu1  ;;  %v1549_v17 = vsel %vm3722_vm9, %v1530_v60, 0.0 }
 0x356   : > { %v1534_v63 = vpop.f32.mrb[18].mxu1  ;;  %v1550_v19 = vsel %vm3730_vm11, %v1532_v61, 0.0 }
 0x357   : > { %v1536_v3 = vpop.f32.mrb[19].mxu1  ;;  %v1551_v23 = vsel %vm3722_vm9, %v1534_v63, 0.0 }
 0x358   : > { %v1552_v26 = vsel %vm3730_vm11, %v1536_v3, 0.0 }
 0x35c   : > { %v1540_v5 = vpop.f32.mrb[20].mxu1 }
 0x35d   : > { %v1542_v6 = vpop.f32.mrb[21].mxu1  ;;  %v1553_v29 = vsel %vm3722_vm9, %v1540_v5, 0.0 }
 0x35e   : > { %v1544_v7 = vpop.f32.mrb[22].mxu1  ;;  %v1554_v12 = vsel %vm3730_vm11, %v1542_v6, 0.0 }
 0x35f   : > { %v1546_v9 = vpop.f32.mrb[23].mxu1  ;;  %v1555_v1 = vsel %vm3722_vm9, %v1544_v7, 0.0 }
 0x360   : > { %v1556_v35 = vsel %vm3730_vm11, %v1546_v9, 0.0 }
 0x364   : > { %v1742_v10 = vpop.f32.mrb[24].mxu1 }
 0x365   : > { %v1761_v0 = vsel %vm3726_vm10, %v1742_v10, 0.0  ;;  %v1744_v18 = vpop.f32.mrb[25].mxu1 }
 0x366   : > { %v2850_v20 = vadd.f32 %v1761_v0, %v1549_v17  ;;  %v1762_v21 = vsel %vm3734_vm12, %v1744_v18, 0.0  ;;  %v1746_v22 = vpop.f32.mrb[26].mxu1 }
 0x367   : > { %v2855_v24 = vadd.f32 %v1762_v21, %v1550_v19  ;;  %v1763_v25 = vsel %vm3726_vm10, %v1746_v22, 0.0  ;;  %v1748_v11 = vpop.f32.mrb[27].mxu1 }
 0x368   : > { %v2860_v27 = vadd.f32 %v1763_v25, %v1551_v23  ;;  %v1764_v47 = vsel %vm3734_vm12, %v1748_v11, 0.0 }
 0x369   : > { %v2865_v28 = vadd.f32 %v1764_v47, %v1552_v26 }
 0x36c   : > { %v1752_v8 = vpop.f32.mrb[28].mxu1 }
 0x36d   : > { %v1765_v43 = vsel %vm3726_vm10, %v1752_v8, 0.0  ;;  %v1754_v2 = vpop.f32.mrb[29].mxu1 }
 0x36e   : > { %v2870_v30 = vadd.f32 %v1765_v43, %v1553_v29  ;;  %v1766_v31 = vsel %vm3734_vm12, %v1754_v2, 0.0  ;;  %v1756_v32 = vpop.f32.mrb[30].mxu1 }
 0x36f   : > { %v2875_v4 = vadd.f32 %v1766_v31, %v1554_v12  ;;  %v1767_v33 = vsel %vm3726_vm10, %v1756_v32, 0.0  ;;  %v1758_v34 = vpop.f32.mrb[31].mxu1 }
 0x370   : > { %v2880_v36 = vadd.f32 %v1767_v33, %v1555_v1  ;;  %v1768_v37 = vsel %vm3734_vm12, %v1758_v34, 0.0 }
 0x371   : > { %v2885_v38 = vadd.f32 %v1768_v37, %v1556_v35 }
 0x374   : > { %v1852_v39 = vpop.f32.mrb[48].mxu0 }
 0x375   : > { %v1871_v40 = vsel %vm3722_vm9, %v1852_v39, 0.0  ;;  %v1854_v41 = vpop.f32.mrb[49].mxu0 }
 0x376   : > { %v2851_v42 = vadd.f32 %v2850_v20, %v1871_v40  ;;  %v1872_v44 = vsel %vm3730_vm11, %v1854_v41, 0.0  ;;  %v1856_v45 = vpop.f32.mrb[50].mxu0 }
 0x377   : > { %v2856_v46 = vadd.f32 %v2855_v24, %v1872_v44  ;;  %v1873_v48 = vsel %vm3722_vm9, %v1856_v45, 0.0  ;;  %v1858_v49 = vpop.f32.mrb[51].mxu0  ;;  %v2056_v50 = vpop.f32.mrb[32].mxu1 }
 0x378   : > { %v2861_v51 = vadd.f32 %v2860_v27, %v1873_v48  ;;  %v1874_v52 = vsel %vm3730_vm11, %v1858_v49, 0.0  ;;  %v2075_v53 = vsel %vm3726_vm10, %v2056_v50, 0.0  ;;  %v2058_v54 = vpop.f32.mrb[33].mxu1 }
 0x379   : > { %v2866_v55 = vadd.f32 %v2865_v28, %v1874_v52  ;;  %v2852_v56 = vadd.f32 %v2851_v42, %v2075_v53  ;;  %v2076_v57 = vsel %vm3734_vm12, %v2058_v54, 0.0  ;;  %v2060_v58 = vpop.f32.mrb[34].mxu1 }
 0x37a   : > { %v2857_v59 = vadd.f32 %v2856_v46, %v2076_v57  ;;  %v2077_v60 = vsel %vm3726_vm10, %v2060_v58, 0.0  ;;  %v2062_v61 = vpop.f32.mrb[35].mxu1 }
 0x37b   : > { %v2862_v63 = vadd.f32 %v2861_v51, %v2077_v60  ;;  %v2078_v3 = vsel %vm3734_vm12, %v2062_v61, 0.0 }
 0x37c   : > { %v2867_v5 = vadd.f32 %v2866_v55, %v2078_v3  ;;  %v1862_v6 = vpop.f32.mrb[52].mxu0 }
 0x37d   : > { %v1875_v7 = vsel %vm3722_vm9, %v1862_v6, 0.0  ;;  %v1864_v9 = vpop.f32.mrb[53].mxu0 }
 0x37e   : > { %v2871_v10 = vadd.f32 %v2870_v30, %v1875_v7  ;;  %v1876_v17 = vsel %vm3730_vm11, %v1864_v9, 0.0  ;;  %v1866_v0 = vpop.f32.mrb[54].mxu0  ;;  %v2420_v7 = vpop.permute.xlu1 %2419 }
 0x37f   : > { %v2876_v18 = vadd.f32 %v2875_v4, %v1876_v17  ;;  %v1877_v19 = vsel %vm3722_vm9, %v1866_v0, 0.0  ;;  %v1868_v20 = vpop.f32.mrb[55].mxu0  ;;  %v2066_v21 = vpop.f32.mrb[36].mxu1 }
 0x380   : > { %v2881_v22 = vadd.f32 %v2880_v36, %v1877_v19  ;;  %v1878_v23 = vsel %vm3730_vm11, %v1868_v20, 0.0  ;;  %v2079_v24 = vsel %vm3726_vm10, %v2066_v21, 0.0  ;;  %v2068_v25 = vpop.f32.mrb[37].mxu1  ;;  %v2425_v20 = vpop.permute.xlu0 %2424 }
 0x381   : > { %v2886_v11 = vadd.f32 %v2885_v38, %v1878_v23  ;;  %v2872_v26 = vadd.f32 %v2871_v10, %v2079_v24  ;;  %v2080_v27 = vsel %vm3734_vm12, %v2068_v25, 0.0  ;;  %v2070_v47 = vpop.f32.mrb[38].mxu1 }
 0x382   : > { %v2877_v28 = vadd.f32 %v2876_v18, %v2080_v27  ;;  %v2081_v8 = vsel %vm3726_vm10, %v2070_v47, 0.0  ;;  %v2072_v29 = vpop.f32.mrb[39].mxu1 }
 0x383   : > { %v2882_v43 = vadd.f32 %v2881_v22, %v2081_v8  ;;  %v2082_v2 = vsel %vm3734_vm12, %v2072_v29, 0.0 }
 0x384   : > { %v2887_v12 = vadd.f32 %v2886_v11, %v2082_v2 }
 0x387   : > { %v2166_v30 = vpop.f32.mrb[40].mxu1 }
 0x388   : > { %v2185_v31 = vsel %vm3722_vm9, %v2166_v30, 0.0  ;;  %v2168_v32 = vpop.f32.mrb[41].mxu1 }
 0x389   : > { %v2853_v1 = vadd.f32 %v2852_v56, %v2185_v31  ;;  %v2186_v4 = vsel %vm3730_vm11, %v2168_v32, 0.0  ;;  %v2170_v33 = vpop.f32.mrb[42].mxu1 }
 0x38a   : > { %v2858_v34 = vadd.f32 %v2857_v59, %v2186_v4  ;;  %v2187_v35 = vsel %vm3722_vm9, %v2170_v33, 0.0  ;;  %v2172_v36 = vpop.f32.mrb[43].mxu1  ;;  %v2430_v33 = vpop.permute.xlu1 %2429 }
 0x38b   : > { %v2863_v37 = vadd.f32 %v2862_v63, %v2187_v35  ;;  %v2188_v38 = vsel %vm3730_vm11, %v2172_v36, 0.0 }
 0x38c   : > { %v2868_v39 = vadd.f32 %v2867_v5, %v2188_v38 }
 0x38f   : > { %v2176_v40 = vpop.f32.mrb[44].mxu1 }
 0x390   : > { %v2189_v41 = vsel %vm3722_vm9, %v2176_v40, 0.0  ;;  %v2178_v42 = vpop.f32.mrb[45].mxu1  ;;  %v2435_v40 = vpop.permute.xlu0 %2434 }
 0x391   : > { %v2873_v44 = vadd.f32 %v2872_v26, %v2189_v41  ;;  %v2190_v45 = vsel %vm3730_vm11, %v2178_v42, 0.0  ;;  %v2180_v46 = vpop.f32.mrb[46].mxu1 }
 0x392   : > { %v2878_v48 = vadd.f32 %v2877_v28, %v2190_v45  ;;  %v2191_v49 = vsel %vm3722_vm9, %v2180_v46, 0.0  ;;  %v2182_v50 = vpop.f32.mrb[47].mxu1 }
 0x393   : > { %v2883_v51 = vadd.f32 %v2882_v43, %v2191_v49  ;;  %v2192_v52 = vsel %vm3730_vm11, %v2182_v50, 0.0 }
 0x394   : > { %v2888_v53 = vadd.f32 %v2887_v12, %v2192_v52  ;;  %v2276_v54 = vpop.f32.mrb[40].mxu0  ;;  %v2462_v52 = vld [vmem:[%s4244_s5] sm:$0xff] }
 0x395   : > { %v2854_v55 = vadd.f32 %v2853_v1, %v2276_v54  ;;  %v2278_v56 = vpop.f32.mrb[41].mxu0 }
 0x396   : > { %v2859_v57 = vadd.f32 %v2858_v34, %v2278_v56  ;;  %v2280_v58 = vpop.f32.mrb[42].mxu0 }
 0x397   : > { %v2864_v59 = vadd.f32 %v2863_v37, %v2280_v58  ;;  %v2282_v60 = vpop.f32.mrb[43].mxu0  ;;  %v2378_v61 = vpop.f32.mrb[48].mxu1 }
 0x398   : > { %v2869_v63 = vadd.f32 %v2868_v39, %v2282_v60  ;;  %v2397_v3 = vsel %vm3726_vm10, %v2378_v61, 0.0  ;;  %v2380_v13 = vpop.f32.mrb[49].mxu1 }
 0x399   : > { %v2405_v5 = vadd.f32 %v2854_v55, %v2397_v3  ;;  %v2398_v6 = vsel %vm3734_vm12, %v2380_v13, 0.0  ;;  %v2382_v15 = vpop.f32.mrb[50].mxu1  ;;  %v2464_v55 = vld [vmem:[%s4244_s5 + $0x10] sm:$0xff] }
 0x39a   : > { %v2406_v9 = vadd.f32 %v2859_v57, %v2398_v6  ;;  %v2399_v10 = vsel %vm3726_vm10, %v2382_v15, 0.0  ;;  %v2384_v17 = vpop.f32.mrb[51].mxu1 }
 0x39b   : > { %v2407_v0 = vadd.f32 %v2864_v59, %v2399_v10  ;;  %v2400_v18 = vsel %vm3734_vm12, %v2384_v17, 0.0  ;;  %v4090_v19 = vadd.f32 %v2420_v7, %v2405_v5  ;;  %v2465_v59 = vld [vmem:[%s4244_s5 + $0x18] sm:$0xff] }
 0x39c   : > { %v2408_v21 = vadd.f32 %v2869_v63, %v2400_v18  ;;  %v2286_v22 = vpop.f32.mrb[44].mxu0  ;;  %v4092_v23 = vadd.f32 %v2420_v7, %v2406_v9 }
 0x39d   : > { %v2874_v24 = vadd.f32 %v2873_v44, %v2286_v22  ;;  %v2288_v25 = vpop.f32.mrb[45].mxu0  ;;  %v4094_v11 = vadd.f32 %v2425_v20, %v2407_v0  ;;  %v2484_v22 = vld [vmem:[%s4245_s6] sm:$0x1] }
 0x39e   : > { %v2879_v26 = vadd.f32 %v2878_v48, %v2288_v25  ;;  %v2290_v27 = vpop.f32.mrb[46].mxu0  ;;  %v2445_v47 = vadd.f32 %v4092_v23, %v4090_v19  ;;  %v4098_v28 = vadd.f32 %v2425_v20, %v2408_v21  ;;  %v2463_v48 = vld [vmem:[%s4244_s5 + $0x8] sm:$0xff]  ;;  %v2492_v21 = vshrl.u32 %v371_v62, 7  ;;  %v2490_v62 = vld [vmem:[%s4246_s7 + $0x18] sm:$0xff] }
 0x39f   : > { %v2884_v8 = vadd.f32 %v2883_v51, %v2290_v27  ;;  %v2292_v29 = vpop.f32.mrb[47].mxu0  ;;  %v2388_v43 = vpop.f32.mrb[52].mxu1 }
 0x3a0   : > { %v2889_v2 = vadd.f32 %v2888_v53, %v2292_v29  ;;  %v2401_v12 = vsel %vm3726_vm10, %v2388_v43, 0.0  ;;  %2446 = vadd.xlane.f32.xlu1 %v2445_v47  ;;  %v2390_v30 = vpop.f32.mrb[53].mxu1  ;;  %v2448_v31 = vadd.f32 %v4098_v28, %v4094_v11  ;;  %v2488_v47 = vld [vmem:[%s4246_s7 + $0x8] sm:$0xff]  ;;  %v2489_v43 = vld [vmem:[%s4246_s7 + $0x10] sm:$0xff] }
 0x3a1   : > { %v2409_v32 = vadd.f32 %v2874_v24, %v2401_v12  ;;  %v2402_v1 = vsel %vm3734_vm12, %v2390_v30, 0.0  ;;  %v2392_v4 = vpop.f32.mrb[54].mxu1 }
 0x3a2   : > { %v2410_v34 = vadd.f32 %v2879_v26, %v2402_v1  ;;  %v2403_v35 = vsel %vm3726_vm10, %v2392_v4, 0.0  ;;  %2449 = vadd.xlane.f32.xlu0 %v2448_v31  ;;  %v2394_v36 = vpop.f32.mrb[55].mxu1  ;;  %v2493_v26 = vsub.s32 0, %v2492_v21 }
 0x3a3   : > { %v2411_v37 = vadd.f32 %v2884_v8, %v2403_v35  ;;  %v2404_v38 = vsel %vm3734_vm12, %v2394_v36, 0.0  ;;  %v4110_v39 = vadd.f32 %v2430_v33, %v2409_v32  ;;  %v2487_v8 = vld [vmem:[%s4246_s7] sm:$0xff] }
 0x3a4   : > { %v2412_v41 = vadd.f32 %v2889_v2, %v2404_v38  ;;  %v4112_v42 = vadd.f32 %v2430_v33, %v2410_v34  ;;  %v2512_v34 = vld [vmem:[%s4247_s8 + $0x8] sm:$0xff]  ;;  %v2511_v35 = vld [vmem:[%s4247_s8] sm:$0xff] }
 0x3a5   : > { %v4114_v44 = vadd.f32 %v2435_v40, %v2411_v37 }
 0x3a6   : > { %v2451_v45 = vadd.f32 %v4112_v42, %v4110_v39  ;;  %v4118_v46 = vadd.f32 %v2435_v40, %v2412_v41  ;;  %v2514_v41 = vld [vmem:[%s4247_s8 + $0x18] sm:$0xff] }
 0x3a8   : > { %2452 = vadd.xlane.f32.xlu0 %v2451_v45  ;;  %v2454_v14 = vadd.f32 %v4118_v46, %v4114_v44  ;;  %v2513_v45 = vld [vmem:[%s4247_s8 + $0x10] sm:$0xff] }
 0x3aa   : > { %2455 = vadd.xlane.f32.xlu1 %v2454_v14 }
 0x42d   : > { %v2447_v16 = vpop.xlane.xlu1 %2446 }
 0x42e   : > { %v2458_v50 = vmul.f32 0.00390625, %v2447_v16 }
 0x42f   : > { %v2450_v49 = vpop.xlane.xlu0 %2449 }
 0x430   : > { %v2459_v51 = vmul.f32 0.00390625, %v2450_v49  ;;  %v2466_v54 = vmul.f32 %v2462_v52, %v2458_v50 }
 0x432   : > { %v2467_v53 = vmul.f32 %v2463_v48, %v2459_v51  ;;  %v2471_v61 = vsel %vm2470_vm13, %v2466_v54, 0.0 }
 0x434   : > { %v2472_v57 = vsel %vm2470_vm13, %v2467_v53, 0.0 }
 0x435   : > { %v2453_v56 = vpop.xlane.xlu0 %2452  ;;  %v2473_v13 = vadd.f32 %v2472_v57, %v2471_v61 }
 0x436   : > { %v2460_v58 = vmul.f32 0.00390625, %v2453_v56 }
 0x437   : > { %v2456_v60 = vpop.xlane.xlu1 %2455 }
 0x438   : > { %v2468_v63 = vmul.f32 %v2464_v55, %v2460_v58  ;;  %v2461_v3 = vmul.f32 0.00390625, %v2456_v60 }
 0x43a   : > { %v2474_v5 = vsel %vm2470_vm13, %v2468_v63, 0.0  ;;  %v2469_v6 = vmul.f32 %v2465_v59, %v2461_v3 }
 0x43b   : > { %v2475_v15 = vadd.f32 %v2474_v5, %v2473_v13 }
 0x43c   : > { %v2476_v7 = vsel %vm2470_vm13, %v2469_v6, 0.0 }
 0x43d   : > { %v2477_v9 = vadd.f32 %v2476_v7, %v2475_v15 }
 0x43f   : > { %v2478_v10 = vrot.slane %v2477_v9, 4 }
 0x441   : > { %v2479_v17 = vadd.f32 %v2478_v10, %v2477_v9 }
 0x443   : > { %v2480_v0 = vrot.slane %v2479_v17, 2 }
 0x445   : > { %v2481_v18 = vadd.f32 %v2480_v0, %v2479_v17  ;;  %v3117_v0 = vld [vmem:[%s3467_s19 + $0x10] sm:$0xff] }
 0x447   : > { %v2482_v20 = vrot.slane %v2481_v18, 1 }
 0x449   : > { %v2483_v24 = vadd.f32 %v2482_v20, %v2481_v18  ;;  %v3118_v20 = vld [vmem:[%s3467_s19 + $0x18] sm:$0xff] }
 0x44b   : > { %v2485_v25 = vadd.f32 %v2484_v22, %v2483_v24  ;;  %v3119_v22 = vld [vmem:[%s3467_s19] sm:$0xff] }
 0x44d   : > { %v2486_v27 = vmax.f32 %v2485_v25, 0.0  ;;  %v3120_v25 = vld [vmem:[%s3467_s19 + $0x8] sm:$0xff] }
 0x44f   : > { %v2494_v29 = vrot.slane %v2486_v27, %v2493_v26 }
 0x451   : > { %v2496_v2 = vmul.f32 %v2494_v29, %v2488_v47  ;;  %v2495_v12 = vmul.f32 %v2494_v29, %v2487_v8  ;;  %v2498_v32 = vmul.f32 %v2494_v29, %v2490_v62  ;;  %v2497_v1 = vmul.f32 %v2494_v29, %v2489_v43  ;;  %v3121_v8 = vld [vmem:[%s3467_s19 + $0x20] sm:$0xff]  ;;  %v3122_v62 = vld [vmem:[%s3467_s19 + $0x28] sm:$0xff] }
 0x453   : > { %v2502_v30 = vsel %vm2470_vm13, %v2496_v2, 0.0  ;;  %v2499_v31 = vsel %vm2470_vm13, %v2495_v12, 0.0  ;;  %v2508_v4 = vsel %vm2470_vm13, %v2498_v32, 0.0  ;;  %v2505_v33 = vsel %vm2470_vm13, %v2497_v1, 0.0  ;;  %v3123_v2 = vld [vmem:[%s3467_s19 + $0x30] sm:$0xff] }
 0x454   : > { %2503 = vadd.xlane.f32.xlu1 %v2502_v30  ;;  %2500 = vadd.xlane.f32.xlu0 %v2499_v31 }
 0x458   : > { %2509 = vadd.xlane.f32.xlu1 %v2508_v4  ;;  %2506 = vadd.xlane.f32.xlu0 %v2505_v33 }
 0x4e1   : > { %v2504_v36 = vpop.xlane.xlu1 %2503  ;;  %v2501_v37 = vpop.xlane.xlu0 %2500 }
 0x4e2   : > { %v2516_v38 = vadd.f32 %v2512_v34, %v2504_v36  ;;  %v2515_v40 = vadd.f32 %v2511_v35, %v2501_v37 }
 0x4e4   : > { %v2800_v14 = vmul.f32 -1.442695, %v2516_v38  ;;  %v2799_v16 = vmul.f32 -1.442695, %v2515_v40 }
 0x4e5   : > { %v2510_v48 = vpop.xlane.xlu1 %2509  ;;  %v2507_v49 = vpop.xlane.xlu0 %2506 }
 0x4e6   : > { %3101 = vpow2.f32 %v2800_v14  ;;  %v2518_v50 = vadd.f32 %v2514_v41, %v2510_v48  ;;  %v2517_v51 = vadd.f32 %v2513_v45, %v2507_v49 }
 0x4e7   : > { %3103 = vpow2.f32 %v2799_v16 }
 0x4e8   : > { %v2802_v52 = vmul.f32 -1.442695, %v2518_v50  ;;  %v2801_v53 = vmul.f32 -1.442695, %v2517_v51 }
 0x4ea   : > { %3105 = vpow2.f32 %v2802_v52 }
 0x4eb   : > { %3107 = vpow2.f32 %v2801_v53 }
 0x4f0   : > { %v3102_v54 = vpop.eup %3101 }
 0x4f1   : > { %v3104_v55 = vpop.eup %3103  ;;  %v2532_v56 = vadd.f32 1.0, %v3102_v54 }
 0x4f2   : > { %v2531_v57 = vadd.f32 1.0, %v3104_v55 }
 0x4f3   : > { %3109 = vrcp.f32 %v2532_v56 }
 0x4f4   : > { %v3106_v58 = vpop.eup %3105  ;;  %3111 = vrcp.f32 %v2531_v57 }
 0x4f5   : > { %v3108_v59 = vpop.eup %3107  ;;  %v2534_v60 = vadd.f32 1.0, %v3106_v58 }
 0x4f6   : > { %v2533_v61 = vadd.f32 1.0, %v3108_v59 }
 0x4f7   : > { %3113 = vrcp.f32 %v2534_v60 }
 0x4f8   : > { %3115 = vrcp.f32 %v2533_v61 }
 0x4fd   : > { %v3110_v63 = vpop.eup %3109 }
 0x4fe   : > { %v3112_v3 = vpop.eup %3111  ;;  %2550 = vperm.xlu1 %3028, %v3110_v63  }
 0x4ff   : > { %2545 = vperm.xlu0 %3029, %v3112_v3  }
 0x501   : > { %v3114_v13 = vpop.eup %3113 }
 0x502   : > { %v3116_v5 = vpop.eup %3115 }
 0x503   : > { %2560 = vperm.xlu0 %3029, %v3114_v13   ;;  %2555 = vperm.xlu1 %3028, %v3116_v5  }
 0x57d   : > { %v2551_v6 = vpop.permute.xlu1 %2550 }
 0x57e   : > { %v2565_v15 = vmul.f32 %v2551_v6, %v4094_v11  ;;  %v2566_v7 = vmul.f32 %v2551_v6, %v4098_v28  ;;  %v2546_v9 = vpop.permute.xlu0 %2545 }
 0x57f   : > { %v2563_v10 = vmul.f32 %v2546_v9, %v4090_v19  ;;  %v2564_v17 = vmul.f32 %v2546_v9, %v4092_v23 }
 0x580   : > { %v2573_v18 = vadd.f32 %v3117_v0, %v2565_v15  ;;  %v2574_v21 = vadd.f32 %v3118_v20, %v2566_v7 }
 0x581   : > { %v2571_v24 = vadd.f32 %v3119_v22, %v2563_v10  ;;  %v2572_v26 = vadd.f32 %v3120_v25, %v2564_v17 }
 0x582   : > { %2581 = vst [vmem:[%s365_s22 + $0x10] sm:$0xff] %v2573_v18  ;;  %2582 = vst [vmem:[%s365_s22 + $0x18] sm:$0xff] %v2574_v21  ;;  %v2556_v11 = vpop.permute.xlu1 %2555  ;;  %v2561_v19 = vpop.permute.xlu0 %2560 }
 0x583   : > { %2579 = vst [vmem:[%s365_s22] sm:$0xff] %v2571_v24  ;;  %2580 = vst [vmem:[%s365_s22 + $0x8] sm:$0xff] %v2572_v26  ;;  %v2567_v23 = vmul.f32 %v2556_v11, %v4110_v39  ;;  %v2568_v28 = vmul.f32 %v2556_v11, %v4112_v42  ;;  %v2569_v27 = vmul.f32 %v2561_v19, %v4114_v44  ;;  %v3124_v39 = vld [vmem:[%s3467_s19 + $0x38] sm:$0xff]  ;;  %s3189_s19 = scalar_lea.vmem %s3188_s25, 2048 }
 0x584   : > { %v2570_v47 = vmul.f32 %v2561_v19, %v4118_v46  ;;  %p3191_p13 = scmp.lt.s32.totalorder %s3189_s19, %s3183_s21 }
 0x585   : > { %v2575_v29 = vadd.f32 %v3121_v8, %v2567_v23  ;;  %v2576_v43 = vadd.f32 %v3122_v62, %v2568_v28  ;;  %v2577_v12 = vadd.f32 %v3123_v2, %v2569_v27 }
 0x586   : > { %v2578_v30 = vadd.f32 %v3124_v39, %v2570_v47  ;;  %p3192_p3 = por %p3191_p13, %p3190_p10 }
 0x587   : > { %2583 = vst [vmem:[%s365_s22 + $0x20] sm:$0xff] %v2575_v29  ;;  %2584 = vst [vmem:[%s365_s22 + $0x28] sm:$0xff] %v2576_v43 }
 0x588   : > { %2585 = vst [vmem:[%s365_s22 + $0x30] sm:$0xff] %v2577_v12  ;;  %2586 = vst [vmem:[%s365_s22 + $0x38] sm:$0xff] %v2578_v30  ;;  %p3193_p7 = pnand %p3192_p3, %p3186_p8 }
 0x58a   : > { %3196 = shalt.err (!%p3193_p7)
}
 0x58b   : > { %s3197_s27 = scalar_lea.hbm %s4188_s16, 1024  ;;  %s3201_s22 = scalar_lea.hbm %s4248_s9, 2048 }
 0x58c   : > { %p3198_p9 = scmp.ne.s32.totalorder %s4188_s16, %s3197_s27  ;;  %p3202_p5 = scmp.lt.u32.totalorder %s4188_s16, %s4248_s9 }
 0x58d   : > { %p3203_p11 = scmp.lt.u32.totalorder %s3201_s22, %s3197_s27  ;;  %p3205_p4 = scmp.lt.u32.totalorder %s3197_s27, %s4188_s16 }
 0x58e   : > { %p3199_p2 = pnand %p3198_p9, %p3413_p12 }
 0x58f   : > { %p3204_p1 = por %p3203_p11, %p3202_p5 }
 0x590   : > { %p3200_p0 = pneg %p3199_p2 }
 0x591   : > { %p3206_p6 = por %p3205_p4, %p3204_p1 }
 0x593   : > { %p3207_p8 = pnand %p3206_p6, %p3200_p0 }
 0x595   : > { %3210 = shalt.err (!%p3207_p8)
}
 0x596   : > { %s3271_s21 = smov 256  }
 0x597   : > { %2928 = dma.vmem_to_hbm [thread:$0]  (%p3413_p12), %s4194_s23, 1024, %s4188_s16, %s2588_s15, %s3271_s21, %s3271_s21, %s3263_s17  }
 0x598 PF: > { %s4290_s26 = sld [smem:[#allocation12_spill]]  ;;  %s2616_s25 = sand.u32 1, %s3241_s30  }
 0x599   : > { %p4292_p13 = scmp.ge.s32.totalorder %s3253_s12, 2  ;;  %s2617_s19 = scalar_lea.sflag [#allocation5], %s2616_s25 }
 0x59e   : > { %p4291_p10 = scmp.ne.s32.totalorder %s4290_s26, 0 }
 0x5a0   : > { %p2939_p3 = pnand %p4292_p13, %p4291_p10 }
 0x5a2   : > { %3236 = dma.done.wait (!%p2939_p3), %s2617_s19, 1024  }
 0x5a3   : > { %3238 = vsyncadd (!%p2939_p3), %s2617_s19, 4294966272  ;;  %s4293_s12 = sld [smem:[#allocation13_spill]]  ;;  %s4294_s30 = smov %s3245_s10 }
 0x5a4   : > { %s4295_s10 = smov %s3249_s11  ;;  %s4296_s11 = smov %s3409_s28 }
 0x5a9   : > { %p23_p7 = scmp.ge.s32.totalorder %s4293_s12, 4  }
 0x5ab   :  { %25 = sbr.rel (!%p23_p7) target bundleno = 6 (0x6), region = 121 }
 0x5b2   :  { %2622 = vsyncpa [#allocation4], 1 }
 0x5b3   :  { %2624 = vsyncpa [#allocation4 + $0x1], 1 }
 0x5b4   :  { %2625 = vsyncpa [#allocation7], 1 }
 0x5b5   :  { %2626 = vsyncpa [#allocation5], 1 }
 0x5b6   :  { %2628 = vsyncpa [#allocation5 + $0x1], 1 }

</bundles_post_ra>
